<compile_context>
chip_gen: v5e
topology: v5e:2x2
jax: 0.10.0
libtpu: 0.0.40
codegen_flags: <defaults>
</compile_context>

<pallas_src>
import functools
import math

import jax
import jax.numpy as jnp
from jax import lax
from jax.experimental import pallas as pl
from jax.experimental.pallas import tpu as pltpu

_LN_EPS = 1e-5
_NEG_INF = -1e30  # large finite negative: safe even if fully-masked rows ever appear


# ----------------------------- Pallas kernels ------------------------------

def _layer_norm(z, gamma, beta, eps):
    mu = jnp.mean(z, axis=-1, keepdims=True)
    var = jnp.mean((z - mu) * (z - mu), axis=-1, keepdims=True)
    return (z - mu) * lax.rsqrt(var + eps) * gamma + beta


def _attn_core(xq, xkv, wq_ref, bq_ref, wkv_ref, bkv_ref, wo_ref, bo_ref,
               g_ref, beta_ref, o_ref, *, num_heads, causal, eps):
    """Fused QKV proj + head-batched MHA + out proj + residual + LayerNorm.

    xq: (L, D) f32; xkv: (S, D) f32 (may be the same value for self-attention).
    The softmax scale is pre-folded into wq/bq.  wo_ref is head-major (H, E, D).
    """
    L, D = xq.shape
    S = xkv.shape[0]
    H = num_heads
    E = D // H

    # --- projections (bf16 MXU operands, f32 accumulation) ---
    q = jnp.dot(xq.astype(jnp.bfloat16), wq_ref[...],
                preferred_element_type=jnp.float32) + bq_ref[...]         # (L, D)
    kv = jnp.dot(xkv.astype(jnp.bfloat16), wkv_ref[...],
                 preferred_element_type=jnp.float32) + bkv_ref[...]       # (S, 2D)

    # --- head-batched attention: one batched contraction for all heads ---
    q_h = jnp.transpose(q.reshape(L, H, E), (1, 0, 2)).astype(jnp.bfloat16)        # (H, L, E)
    k_h = jnp.transpose(kv[:, :D].reshape(S, H, E), (1, 0, 2)).astype(jnp.bfloat16)  # (H, S, E)
    v_h = jnp.transpose(kv[:, D:].reshape(S, H, E), (1, 0, 2)).astype(jnp.bfloat16)  # (H, S, E)

    s = jnp.einsum('hqe,hke->hqk', q_h, k_h,
                   preferred_element_type=jnp.float32)                    # (H, L, S) f32
    if causal:
        # mask built once; broadcasts over the head dimension
        row = lax.broadcasted_iota(jnp.int32, (L, S), 0)
        col = lax.broadcasted_iota(jnp.int32, (L, S), 1)
        s = jnp.where(col > row, _NEG_INF, s)

    m = jnp.max(s, axis=-1, keepdims=True)
    p = jnp.exp(s - m)
    p = p * pl.reciprocal(jnp.sum(p, axis=-1, keepdims=True), approx=True)

    o_h = jnp.einsum('hqk,hke->hqe', p.astype(jnp.bfloat16), v_h,
                     preferred_element_type=jnp.float32)                  # (H, L, E)

    # --- out projection applied per head (head-major weight, no concat) ---
    proj = jnp.einsum('hqe,hed->hqd', o_h.astype(jnp.bfloat16), wo_ref[...],
                      preferred_element_type=jnp.float32)                 # (H, L, D)
    proj = jnp.sum(proj, axis=0) + bo_ref[...]                            # (L, D)

    # --- residual + LayerNorm (f32) ---
    z = xq + proj
    o_ref[0] = _layer_norm(z, g_ref[...], beta_ref[...], eps).astype(o_ref.dtype)


def _self_attn_kernel(x_ref, wq_ref, bq_ref, wkv_ref, bkv_ref, wo_ref, bo_ref,
                      g_ref, beta_ref, o_ref, *, num_heads, eps):
    # x is DMA'd ONCE and reused for both the Q and the K/V projections.
    x = x_ref[0].astype(jnp.float32)
    _attn_core(x, x, wq_ref, bq_ref, wkv_ref, bkv_ref, wo_ref, bo_ref,
               g_ref, beta_ref, o_ref, num_heads=num_heads, causal=True, eps=eps)


def _cross_attn_kernel(xq_ref, xkv_ref, wq_ref, bq_ref, wkv_ref, bkv_ref,
                       wo_ref, bo_ref, g_ref, beta_ref, o_ref, *, num_heads, eps):
    xq = xq_ref[0].astype(jnp.float32)
    xkv = xkv_ref[0].astype(jnp.float32)
    _attn_core(xq, xkv, wq_ref, bq_ref, wkv_ref, bkv_ref, wo_ref, bo_ref,
               g_ref, beta_ref, o_ref, num_heads=num_heads, causal=False, eps=eps)


def _ffn_block_kernel(x_ref, w1_ref, b1_ref, w2_ref, b2_ref, g_ref, beta_ref,
                      o_ref, *, eps):
    """Row tile: fused linear1 + relu + linear2 + residual + LayerNorm."""
    x = x_ref[...]                                                        # (T, D) bf16/f32
    h = jnp.dot(x.astype(jnp.bfloat16), w1_ref[...],
                preferred_element_type=jnp.float32) + b1_ref[...]         # (T, Dff) f32
    h = jnp.maximum(h, 0.0).astype(jnp.bfloat16)   # bf16 intermediate: halves live bytes
    y = jnp.dot(h, w2_ref[...], preferred_element_type=jnp.float32) + b2_ref[...]
    z = x.astype(jnp.float32) + y
    o_ref[...] = _layer_norm(z, g_ref[...], beta_ref[...], eps).astype(o_ref.dtype)


# ------------------------------ Thin wrappers -------------------------------

def _attention_block(x_q, x_kv, p, gamma, beta, num_heads, *, self_attn):
    """LayerNorm(x_q + OutProj(MHA(x_q, x_kv, x_kv))) — one pallas_call, grid=(B,)."""
    B, L, D = x_q.shape
    S = x_kv.shape[1]
    H = num_heads
    E = D // H

    const2 = lambda b: (0, 0)     # weights / biases resident across the batch grid
    const3 = lambda b: (0, 0, 0)
    weight_specs = [
        pl.BlockSpec((D, D), const2),        # wq (bf16, softmax scale folded in)
        pl.BlockSpec((1, D), const2),        # bq
        pl.BlockSpec((D, 2 * D), const2),    # wkv (bf16, fused k|v)
        pl.BlockSpec((1, 2 * D), const2),    # bkv
        pl.BlockSpec((H, E, D), const3),     # wo (bf16, head-major)
        pl.BlockSpec((1, D), const2),        # bo
        pl.BlockSpec((1, D), const2),        # LN gamma
        pl.BlockSpec((1, D), const2),        # LN beta
    ]
    weights = (p["wq"], p["bq"], p["wkv"], p["bkv"], p["wo"], p["bo"], gamma, beta)

    flops = B * (2 * L * D * D            # Q projection
                 + 2 * S * D * 2 * D      # fused K|V projection
                 + 4 * H * L * S * E      # scores + P@V
                 + 2 * L * D * D)         # out projection
    transcendentals = B * H * L * S
    bytes_accessed = (sum(int(w.size) * w.dtype.itemsize for w in weights)
                      + int(x_q.size) * x_q.dtype.itemsize
                      + (0 if self_attn else int(x_kv.size) * x_kv.dtype.itemsize)
                      + B * L * D * 2)    # bf16 output
    cost = pl.CostEstimate(flops=int(flops), transcendentals=int(transcendentals),
                           bytes_accessed=int(bytes_accessed))

    if self_attn:
        kern = functools.partial(_self_attn_kernel, num_heads=H, eps=_LN_EPS)
        in_specs = [pl.BlockSpec((1, L, D), lambda b: (b, 0, 0))] + weight_specs
        args = (x_q,) + weights
    else:
        kern = functools.partial(_cross_attn_kernel, num_heads=H, eps=_LN_EPS)
        in_specs = [pl.BlockSpec((1, L, D), lambda b: (b, 0, 0)),
                    pl.BlockSpec((1, S, D), lambda b: (b, 0, 0))] + weight_specs
        args = (x_q, x_kv) + weights

    return pl.pallas_call(
        kern,
        grid=(B,),
        in_specs=in_specs,
        out_specs=pl.BlockSpec((1, L, D), lambda b: (b, 0, 0)),
        # bf16 inter-block activations: halves HBM traffic between the 3 kernels.
        out_shape=jax.ShapeDtypeStruct((B, L, D), jnp.bfloat16),
        compiler_params=pltpu.CompilerParams(dimension_semantics=("parallel",)),
        cost_estimate=cost,
    )(*args)


def ffn_block(x, p, gamma, beta):
    """LayerNorm(x + W2 relu(W1 x + b1) + b2) — one pallas_call over row tiles."""
    B, L, D = x.shape
    N = B * L
    Dff = p["w1"].shape[1]
    # Large lane-dense row tiles; cdiv grid handles a partial last tile.
    row_tile = N if N <= 512 else 512
    x2 = x.reshape(N, D)

    flops = 4 * N * D * Dff
    bytes_accessed = (int(x2.size) * x2.dtype.itemsize + N * D * 4
                      + sum(int(w.size) * w.dtype.itemsize
                            for w in (p["w1"], p["b1"], p["w2"], p["b2"], gamma, beta)))

    const = lambda i: (0, 0)
    out = pl.pallas_call(
        functools.partial(_ffn_block_kernel, eps=_LN_EPS),
        grid=(pl.cdiv(N, row_tile),),
        in_specs=[
            pl.BlockSpec((row_tile, D), lambda i: (i, 0)),  # x rows (bf16)
            pl.BlockSpec((D, Dff), const),                  # w1 (bf16)
            pl.BlockSpec((1, Dff), const),                  # b1
            pl.BlockSpec((Dff, D), const),                  # w2 (bf16)
            pl.BlockSpec((1, D), const),                    # b2
            pl.BlockSpec((1, D), const),                    # LN gamma
            pl.BlockSpec((1, D), const),                    # LN beta
        ],
        out_specs=pl.BlockSpec((row_tile, D), lambda i: (i, 0)),
        out_shape=jax.ShapeDtypeStruct((N, D), jnp.float32),
        compiler_params=pltpu.CompilerParams(dimension_semantics=("parallel",)),
        cost_estimate=pl.CostEstimate(flops=int(flops), transcendentals=0,
                                      bytes_accessed=int(bytes_accessed)),
    )(x2, p["w1"], p["b1"], p["w2"], p["b2"], gamma, beta)
    return out.reshape(B, L, D)


def decoder_layer(hidden_states, cross, params, num_heads):
    # self-attention block (causal) + residual + norm1  (single fused kernel)
    x1 = _attention_block(hidden_states, hidden_states, params["self_attn"],
                          params["ln1_g"], params["ln1_b"], num_heads, self_attn=True)
    # cross-attention block + residual + norm2          (single fused kernel)
    x2 = _attention_block(x1, cross, params["cross_attn"],
                          params["ln2_g"], params["ln2_b"], num_heads, self_attn=False)
    # feed-forward block + residual + norm3             (single fused kernel)
    return ffn_block(x2, params, params["ln3_g"], params["ln3_b"])


# --------------------------- Parameter construction --------------------------

def make_params(key, d_model, num_heads, dim_feedforward):
    E = d_model // num_heads
    scale = 1.0 / math.sqrt(E)

    def lin(k, din, dout):
        kw, kb = jax.random.split(k)
        w = jax.random.normal(kw, (din, dout), jnp.float32) * 0.02
        b = jax.random.normal(kb, (dout,), jnp.float32) * 0.02
        return w, b

    keys = jax.random.split(key, 10)

    def attn_params(ks):
        wq, bq = lin(ks[0], d_model, d_model)
        wk, bk = lin(ks[1], d_model, d_model)
        wv, bv = lin(ks[2], d_model, d_model)
        wo, bo = lin(ks[3], d_model, d_model)
        return dict(
            # 1/sqrt(E) softmax scale folded into the query projection (free).
            wq=(wq * scale).astype(jnp.bfloat16),
            bq=(bq * scale).reshape(1, d_model),
            # pre-fused K|V projection -> one MXU matmul inside the kernel
            wkv=jnp.concatenate([wk, wv], axis=1).astype(jnp.bfloat16),
            bkv=jnp.concatenate([bk, bv]).reshape(1, 2 * d_model),
            # head-major out projection (H, E, D): kernel never concats heads
            wo=wo.reshape(num_heads, E, d_model).astype(jnp.bfloat16),
            bo=bo.reshape(1, d_model),
        )

    w1, b1 = lin(keys[8], d_model, dim_feedforward)
    w2, b2 = lin(keys[9], dim_feedforward, d_model)
    ones = jnp.ones((1, d_model), jnp.float32)
    zeros = jnp.zeros((1, d_model), jnp.float32)
    return dict(
        self_attn=attn_params(keys[0:4]),
        cross_attn=attn_params(keys[4:8]),
        w1=w1.astype(jnp.bfloat16), b1=b1.reshape(1, dim_feedforward),
        w2=w2.astype(jnp.bfloat16), b2=b2.reshape(1, d_model),
        ln1_g=ones, ln1_b=zeros,
        ln2_g=ones, ln2_b=zeros,
        ln3_g=ones, ln3_b=zeros,
    )


# ----------------------------------- Main ------------------------------------

if __name__ == "__main__":
    B, L, S = 2, 8, 8
    d_model, num_heads, dim_feedforward = 32, 4, 64

    key = jax.random.PRNGKey(0)
    k_x, k_c, k_p = jax.random.split(key, 3)
    hidden_states = jax.random.normal(k_x, (B, L, d_model), jnp.float32)
    cross = jax.random.normal(k_c, (B, S, d_model), jnp.float32)
    params = make_params(k_p, d_model, num_heads, dim_feedforward)

    fn = jax.jit(decoder_layer, static_argnums=3)
    out = fn(hidden_states, cross, params, num_heads)
    out = jax.block_until_ready(out)
    assert out.shape == (B, L, d_model) and out.dtype == jnp.float32
    print("KERNEL_OK")
</pallas_src>

<mosaic_0001>
module attributes {stable_mosaic.version = 11 : i64} {
  func.func @_ffn_block_kernel(%arg0: i32, %arg1: memref<16x32xbf16, #tpu.memory_space<vmem>>, %arg2: memref<32x64xbf16, #tpu.memory_space<vmem>>, %arg3: memref<1x64xf32, #tpu.memory_space<vmem>>, %arg4: memref<64x32xbf16, #tpu.memory_space<vmem>>, %arg5: memref<1x32xf32, #tpu.memory_space<vmem>>, %arg6: memref<1x32xf32, #tpu.memory_space<vmem>>, %arg7: memref<1x32xf32, #tpu.memory_space<vmem>>, %arg8: memref<16x32xf32, #tpu.memory_space<vmem>>) attributes {dimension_semantics = [#tpu.dimension_semantics<parallel>], iteration_bounds = array<i64: 1>, scalar_prefetch = 0 : i64, scratch_operands = 0 : i64, tpu.core_type = #tpu.core_type<tc>, window_params = [{transform_indices = @transform_0, window_bounds = array<i64: 16, 32>}, {pipeline_mode = #tpu.pipeline_mode<synchronous>, transform_indices = @transform_1, window_bounds = array<i64: 32, 64>}, {pipeline_mode = #tpu.pipeline_mode<synchronous>, transform_indices = @transform_2, window_bounds = array<i64: 1, 64>}, {pipeline_mode = #tpu.pipeline_mode<synchronous>, transform_indices = @transform_3, window_bounds = array<i64: 64, 32>}, {pipeline_mode = #tpu.pipeline_mode<synchronous>, transform_indices = @transform_4, window_bounds = array<i64: 1, 32>}, {pipeline_mode = #tpu.pipeline_mode<synchronous>, transform_indices = @transform_5, window_bounds = array<i64: 1, 32>}, {pipeline_mode = #tpu.pipeline_mode<synchronous>, transform_indices = @transform_6, window_bounds = array<i64: 1, 32>}, {transform_indices = @transform_7, window_bounds = array<i64: 16, 32>}]} {
    %c0 = arith.constant 0 : index
    %c0_0 = arith.constant 0 : index
    %0 = vector.load %arg1[%c0, %c0_0] : memref<16x32xbf16, #tpu.memory_space<vmem>>, vector<16x32xbf16>
    %c0_1 = arith.constant 0 : index
    %c0_2 = arith.constant 0 : index
    %1 = vector.load %arg2[%c0_1, %c0_2] : memref<32x64xbf16, #tpu.memory_space<vmem>>, vector<32x64xbf16>
    %cst = arith.constant dense<0.000000e+00> : vector<16x64xf32>
    %2 = tpu.matmul %0, %1, %cst {dimension_numbers = #tpu.dot_dimension_numbers<[1], [0], [0], [1], [0, 0, 1, 1], [], []>} : vector<16x32xbf16>, vector<32x64xbf16>, vector<16x64xf32> -> vector<16x64xf32>
    %c0_3 = arith.constant 0 : index
    %c0_4 = arith.constant 0 : index
    %3 = vector.load %arg3[%c0_3, %c0_4] : memref<1x64xf32, #tpu.memory_space<vmem>>, vector<1x64xf32>
    %4 = vector.broadcast %3 : vector<1x64xf32> to vector<16x64xf32>
    %5 = arith.addf %2, %4 : vector<16x64xf32>
    %cst_5 = arith.constant 0.000000e+00 : f32
    %6 = vector.broadcast %cst_5 : f32 to vector<16x64xf32>
    %7 = arith.maximumf %5, %6 : vector<16x64xf32>
    %8 = arith.truncf %7 : vector<16x64xf32> to vector<16x64xbf16>
    %c0_6 = arith.constant 0 : index
    %c0_7 = arith.constant 0 : index
    %9 = vector.load %arg4[%c0_6, %c0_7] : memref<64x32xbf16, #tpu.memory_space<vmem>>, vector<64x32xbf16>
    %cst_8 = arith.constant dense<0.000000e+00> : vector<16x32xf32>
    %10 = tpu.matmul %8, %9, %cst_8 {dimension_numbers = #tpu.dot_dimension_numbers<[1], [0], [0], [1], [0, 0, 1, 1], [], []>} : vector<16x64xbf16>, vector<64x32xbf16>, vector<16x32xf32> -> vector<16x32xf32>
    %c0_9 = arith.constant 0 : index
    %c0_10 = arith.constant 0 : index
    %11 = vector.load %arg5[%c0_9, %c0_10] : memref<1x32xf32, #tpu.memory_space<vmem>>, vector<1x32xf32>
    %12 = vector.broadcast %11 : vector<1x32xf32> to vector<16x32xf32>
    %13 = arith.addf %10, %12 : vector<16x32xf32>
    %14 = arith.extf %0 : vector<16x32xbf16> to vector<16x32xf32>
    %15 = arith.addf %14, %13 : vector<16x32xf32>
    %c0_11 = arith.constant 0 : index
    %c0_12 = arith.constant 0 : index
    %16 = vector.load %arg6[%c0_11, %c0_12] : memref<1x32xf32, #tpu.memory_space<vmem>>, vector<1x32xf32>
    %c0_13 = arith.constant 0 : index
    %c0_14 = arith.constant 0 : index
    %17 = vector.load %arg7[%c0_13, %c0_14] : memref<1x32xf32, #tpu.memory_space<vmem>>, vector<1x32xf32>
    %cst_15 = arith.constant dense<0.000000e+00> : vector<16xf32>
    %18 = vector.multi_reduction <add>, %15, %cst_15 [1] : vector<16x32xf32> to vector<16xf32>
    %19 = vector.shape_cast %18 : vector<16xf32> to vector<16x1xf32>
    %cst_16 = arith.constant 3.200000e+01 : f32
    %20 = vector.broadcast %cst_16 : f32 to vector<16x1xf32>
    %21 = arith.divf %19, %20 : vector<16x1xf32>
    %22 = vector.broadcast %21 : vector<16x1xf32> to vector<16x32xf32>
    %23 = arith.subf %15, %22 : vector<16x32xf32>
    %24 = vector.broadcast %21 : vector<16x1xf32> to vector<16x32xf32>
    %25 = arith.subf %15, %24 : vector<16x32xf32>
    %26 = arith.mulf %23, %25 : vector<16x32xf32>
    %cst_17 = arith.constant dense<0.000000e+00> : vector<16xf32>
    %27 = vector.multi_reduction <add>, %26, %cst_17 [1] : vector<16x32xf32> to vector<16xf32>
    %28 = vector.shape_cast %27 : vector<16xf32> to vector<16x1xf32>
    %cst_18 = arith.constant 3.200000e+01 : f32
    %29 = vector.broadcast %cst_18 : f32 to vector<16x1xf32>
    %30 = arith.divf %28, %29 : vector<16x1xf32>
    %31 = vector.broadcast %21 : vector<16x1xf32> to vector<16x32xf32>
    %32 = arith.subf %15, %31 : vector<16x32xf32>
    %cst_19 = arith.constant 9.99999974E-6 : f32
    %33 = vector.broadcast %cst_19 : f32 to vector<16x1xf32>
    %34 = arith.addf %30, %33 : vector<16x1xf32>
    %35 = math.rsqrt %34 : vector<16x1xf32>
    %36 = vector.broadcast %35 : vector<16x1xf32> to vector<16x32xf32>
    %37 = arith.mulf %32, %36 : vector<16x32xf32>
    %38 = vector.broadcast %16 : vector<1x32xf32> to vector<16x32xf32>
    %39 = arith.mulf %37, %38 : vector<16x32xf32>
    %40 = vector.broadcast %17 : vector<1x32xf32> to vector<16x32xf32>
    %41 = arith.addf %39, %40 : vector<16x32xf32>
    %c0_20 = arith.constant 0 : index
    %c0_21 = arith.constant 0 : index
    %42 = vector.load %arg8[%c0_20, %c0_21] : memref<16x32xf32, #tpu.memory_space<vmem>>, vector<16x32xf32>
    tpu.vector_store %arg8[%c0_20, %c0_21], %41 {strides = array<i32>} : memref<16x32xf32, #tpu.memory_space<vmem>>, vector<16x32xf32>,
    return
  }
  func.func @transform_0(%arg0: i32) -> (i32, i32) {
    %c0_i32 = arith.constant 0 : i32
    %c0_i32_0 = arith.constant 0 : i32
    return %arg0, %c0_i32 : i32, i32
  }
  func.func @transform_1(%arg0: i32) -> (i32, i32) {
    %c0_i32 = arith.constant 0 : i32
    %c0_i32_0 = arith.constant 0 : i32
    %c0_i32_1 = arith.constant 0 : i32
    return %c0_i32, %c0_i32_0 : i32, i32
  }
  func.func @transform_2(%arg0: i32) -> (i32, i32) {
    %c0_i32 = arith.constant 0 : i32
    %c0_i32_0 = arith.constant 0 : i32
    %c0_i32_1 = arith.constant 0 : i32
    return %c0_i32, %c0_i32_0 : i32, i32
  }
  func.func @transform_3(%arg0: i32) -> (i32, i32) {
    %c0_i32 = arith.constant 0 : i32
    %c0_i32_0 = arith.constant 0 : i32
    %c0_i32_1 = arith.constant 0 : i32
    return %c0_i32, %c0_i32_0 : i32, i32
  }
  func.func @transform_4(%arg0: i32) -> (i32, i32) {
    %c0_i32 = arith.constant 0 : i32
    %c0_i32_0 = arith.constant 0 : i32
    %c0_i32_1 = arith.constant 0 : i32
    return %c0_i32, %c0_i32_0 : i32, i32
  }
  func.func @transform_5(%arg0: i32) -> (i32, i32) {
    %c0_i32 = arith.constant 0 : i32
    %c0_i32_0 = arith.constant 0 : i32
    %c0_i32_1 = arith.constant 0 : i32
    return %c0_i32, %c0_i32_0 : i32, i32
  }
  func.func @transform_6(%arg0: i32) -> (i32, i32) {
    %c0_i32 = arith.constant 0 : i32
    %c0_i32_0 = arith.constant 0 : i32
    %c0_i32_1 = arith.constant 0 : i32
    return %c0_i32, %c0_i32_0 : i32, i32
  }
  func.func @transform_7(%arg0: i32) -> (i32, i32) {
    %c0_i32 = arith.constant 0 : i32
    %c0_i32_0 = arith.constant 0 : i32
    return %arg0, %c0_i32 : i32, i32
  }
}

module attributes {stable_mosaic.version = 11 : i64} {
  func.func @_cross_attn_kernel(%arg0: i32, %arg1: memref<1x8x32xbf16, #tpu.memory_space<vmem>>, %arg2: memref<1x8x32xf32, #tpu.memory_space<vmem>>, %arg3: memref<32x32xbf16, #tpu.memory_space<vmem>>, %arg4: memref<1x32xf32, #tpu.memory_space<vmem>>, %arg5: memref<32x64xbf16, #tpu.memory_space<vmem>>, %arg6: memref<1x64xf32, #tpu.memory_space<vmem>>, %arg7: memref<4x8x32xbf16, #tpu.memory_space<vmem>>, %arg8: memref<1x32xf32, #tpu.memory_space<vmem>>, %arg9: memref<1x32xf32, #tpu.memory_space<vmem>>, %arg10: memref<1x32xf32, #tpu.memory_space<vmem>>, %arg11: memref<1x8x32xbf16, #tpu.memory_space<vmem>>) attributes {dimension_semantics = [#tpu.dimension_semantics<parallel>], iteration_bounds = array<i64: 2>, scalar_prefetch = 0 : i64, scratch_operands = 0 : i64, tpu.core_type = #tpu.core_type<tc>, window_params = [{transform_indices = @transform_0, window_bounds = array<i64: 1, 8, 32>}, {transform_indices = @transform_1, window_bounds = array<i64: 1, 8, 32>}, {pipeline_mode = #tpu.pipeline_mode<synchronous>, transform_indices = @transform_2, window_bounds = array<i64: 32, 32>}, {pipeline_mode = #tpu.pipeline_mode<synchronous>, transform_indices = @transform_3, window_bounds = array<i64: 1, 32>}, {pipeline_mode = #tpu.pipeline_mode<synchronous>, transform_indices = @transform_4, window_bounds = array<i64: 32, 64>}, {pipeline_mode = #tpu.pipeline_mode<synchronous>, transform_indices = @transform_5, window_bounds = array<i64: 1, 64>}, {pipeline_mode = #tpu.pipeline_mode<synchronous>, transform_indices = @transform_6, window_bounds = array<i64: 4, 8, 32>}, {pipeline_mode = #tpu.pipeline_mode<synchronous>, transform_indices = @transform_7, window_bounds = array<i64: 1, 32>}, {pipeline_mode = #tpu.pipeline_mode<synchronous>, transform_indices = @transform_8, window_bounds = array<i64: 1, 32>}, {pipeline_mode = #tpu.pipeline_mode<synchronous>, transform_indices = @transform_9, window_bounds = array<i64: 1, 32>}, {transform_indices = @transform_10, window_bounds = array<i64: 1, 8, 32>}]} {
    %c0 = arith.constant 0 : index
    %c0_0 = arith.constant 0 : index
    %c0_1 = arith.constant 0 : index
    %0 = vector.load %arg1[%c0, %c0_0, %c0_1] : memref<1x8x32xbf16, #tpu.memory_space<vmem>>, vector<1x8x32xbf16>
    %1 = vector.shape_cast %0 : vector<1x8x32xbf16> to vector<8x32xbf16>
    %2 = arith.extf %1 : vector<8x32xbf16> to vector<8x32xf32>
    %c0_2 = arith.constant 0 : index
    %c0_3 = arith.constant 0 : index
    %c0_4 = arith.constant 0 : index
    %3 = vector.load %arg2[%c0_2, %c0_3, %c0_4] : memref<1x8x32xf32, #tpu.memory_space<vmem>>, vector<1x8x32xf32>
    %4 = vector.shape_cast %3 : vector<1x8x32xf32> to vector<8x32xf32>
    %5 = arith.truncf %2 : vector<8x32xf32> to vector<8x32xbf16>
    %c0_5 = arith.constant 0 : index
    %c0_6 = arith.constant 0 : index
    %6 = vector.load %arg3[%c0_5, %c0_6] : memref<32x32xbf16, #tpu.memory_space<vmem>>, vector<32x32xbf16>
    %cst = arith.constant dense<0.000000e+00> : vector<8x32xf32>
    %7 = tpu.matmul %5, %6, %cst {dimension_numbers = #tpu.dot_dimension_numbers<[1], [0], [0], [1], [0, 0, 1, 1], [], []>} : vector<8x32xbf16>, vector<32x32xbf16>, vector<8x32xf32> -> vector<8x32xf32>
    %c0_7 = arith.constant 0 : index
    %c0_8 = arith.constant 0 : index
    %8 = vector.load %arg4[%c0_7, %c0_8] : memref<1x32xf32, #tpu.memory_space<vmem>>, vector<1x32xf32>
    %9 = vector.broadcast %8 : vector<1x32xf32> to vector<8x32xf32>
    %10 = arith.addf %7, %9 : vector<8x32xf32>
    %11 = arith.truncf %4 : vector<8x32xf32> to vector<8x32xbf16>
    %c0_9 = arith.constant 0 : index
    %c0_10 = arith.constant 0 : index
    %12 = vector.load %arg5[%c0_9, %c0_10] : memref<32x64xbf16, #tpu.memory_space<vmem>>, vector<32x64xbf16>
    %cst_11 = arith.constant dense<0.000000e+00> : vector<8x64xf32>
    %13 = tpu.matmul %11, %12, %cst_11 {dimension_numbers = #tpu.dot_dimension_numbers<[1], [0], [0], [1], [0, 0, 1, 1], [], []>} : vector<8x32xbf16>, vector<32x64xbf16>, vector<8x64xf32> -> vector<8x64xf32>
    %c0_12 = arith.constant 0 : index
    %c0_13 = arith.constant 0 : index
    %14 = vector.load %arg6[%c0_12, %c0_13] : memref<1x64xf32, #tpu.memory_space<vmem>>, vector<1x64xf32>
    %15 = vector.broadcast %14 : vector<1x64xf32> to vector<8x64xf32>
    %16 = arith.addf %13, %15 : vector<8x64xf32>
    %17 = vector.shape_cast %10 : vector<8x32xf32> to vector<8x4x8xf32>
    %18 = tpu.transpose %17, [1, 0, 2] : vector<8x4x8xf32> -> vector<4x8x8xf32>
    %19 = arith.truncf %18 : vector<4x8x8xf32> to vector<4x8x8xbf16>
    %20 = vector.extract_strided_slice %16 {offsets = [0, 0], sizes = [8, 32], strides = [1, 1]} : vector<8x64xf32> to vector<8x32xf32>
    %21 = vector.shape_cast %20 : vector<8x32xf32> to vector<8x4x8xf32>
    %22 = tpu.transpose %21, [1, 0, 2] : vector<8x4x8xf32> -> vector<4x8x8xf32>
    %23 = arith.truncf %22 : vector<4x8x8xf32> to vector<4x8x8xbf16>
    %24 = vector.extract_strided_slice %16 {offsets = [0, 32], sizes = [8, 32], strides = [1, 1]} : vector<8x64xf32> to vector<8x32xf32>
    %25 = vector.shape_cast %24 : vector<8x32xf32> to vector<8x4x8xf32>
    %26 = tpu.transpose %25, [1, 0, 2] : vector<8x4x8xf32> -> vector<4x8x8xf32>
    %27 = arith.truncf %26 : vector<4x8x8xf32> to vector<4x8x8xbf16>
    "tpu.trace_start"() <{level = 10 : i32, message = "hqe,hke->hqk"}> : () -> ()
    %cst_14 = arith.constant dense<0.000000e+00> : vector<4x8x8xf32>
    %28 = tpu.matmul %19, %23, %cst_14 {dimension_numbers = #tpu.dot_dimension_numbers<[2], [2], [1], [1], [0, 0, 0, 1, 1, 1], [0], [0]>} : vector<4x8x8xbf16>, vector<4x8x8xbf16>, vector<4x8x8xf32> -> vector<4x8x8xf32>
    "tpu.trace_stop"() : () -> ()
    %cst_15 = arith.constant dense<0xFF800000> : vector<4x8xf32>
    %29 = vector.multi_reduction <maximumf>, %28, %cst_15 [2] : vector<4x8x8xf32> to vector<4x8xf32>
    %30 = vector.shape_cast %29 : vector<4x8xf32> to vector<4x8x1xf32>
    %31 = vector.broadcast %30 : vector<4x8x1xf32> to vector<4x8x8xf32>
    %32 = arith.subf %28, %31 : vector<4x8x8xf32>
    %33 = math.exp %32 : vector<4x8x8xf32>
    %cst_16 = arith.constant dense<0.000000e+00> : vector<4x8xf32>
    %34 = vector.multi_reduction <add>, %33, %cst_16 [2] : vector<4x8x8xf32> to vector<4x8xf32>
    %35 = vector.shape_cast %34 : vector<4x8xf32> to vector<4x8x1xf32>
    %36 = tpu.reciprocal %35 {approx = true} : vector<4x8x1xf32> -> vector<4x8x1xf32>
    %37 = vector.broadcast %36 : vector<4x8x1xf32> to vector<4x8x8xf32>
    %38 = arith.mulf %33, %37 : vector<4x8x8xf32>
    %39 = arith.truncf %38 : vector<4x8x8xf32> to vector<4x8x8xbf16>
    "tpu.trace_start"() <{level = 10 : i32, message = "hqk,hke->hqe"}> : () -> ()
    %cst_17 = arith.constant dense<0.000000e+00> : vector<4x8x8xf32>
    %40 = tpu.matmul %39, %27, %cst_17 {dimension_numbers = #tpu.dot_dimension_numbers<[2], [1], [1], [2], [0, 0, 0, 1, 1, 2], [0], [0]>} : vector<4x8x8xbf16>, vector<4x8x8xbf16>, vector<4x8x8xf32> -> vector<4x8x8xf32>
    "tpu.trace_stop"() : () -> ()
    %41 = arith.truncf %40 : vector<4x8x8xf32> to vector<4x8x8xbf16>
    %c0_18 = arith.constant 0 : index
    %c0_19 = arith.constant 0 : index
    %c0_20 = arith.constant 0 : index
    %42 = vector.load %arg7[%c0_18, %c0_19, %c0_20] : memref<4x8x32xbf16, #tpu.memory_space<vmem>>, vector<4x8x32xbf16>
    "tpu.trace_start"() <{level = 10 : i32, message = "hqe,hed->hqd"}> : () -> ()
    %cst_21 = arith.constant dense<0.000000e+00> : vector<4x8x32xf32>
    %43 = tpu.matmul %41, %42, %cst_21 {dimension_numbers = #tpu.dot_dimension_numbers<[2], [1], [1], [2], [0, 0, 0, 1, 1, 2], [0], [0]>} : vector<4x8x8xbf16>, vector<4x8x32xbf16>, vector<4x8x32xf32> -> vector<4x8x32xf32>
    "tpu.trace_stop"() : () -> ()
    %cst_22 = arith.constant dense<0.000000e+00> : vector<8x32xf32>
    %44 = vector.multi_reduction <add>, %43, %cst_22 [0] : vector<4x8x32xf32> to vector<8x32xf32>
    %c0_23 = arith.constant 0 : index
    %c0_24 = arith.constant 0 : index
    %45 = vector.load %arg8[%c0_23, %c0_24] : memref<1x32xf32, #tpu.memory_space<vmem>>, vector<1x32xf32>
    %46 = vector.broadcast %45 : vector<1x32xf32> to vector<8x32xf32>
    %47 = arith.addf %44, %46 : vector<8x32xf32>
    %48 = arith.addf %2, %47 : vector<8x32xf32>
    %c0_25 = arith.constant 0 : index
    %c0_26 = arith.constant 0 : index
    %49 = vector.load %arg9[%c0_25, %c0_26] : memref<1x32xf32, #tpu.memory_space<vmem>>, vector<1x32xf32>
    %c0_27 = arith.constant 0 : index
    %c0_28 = arith.constant 0 : index
    %50 = vector.load %arg10[%c0_27, %c0_28] : memref<1x32xf32, #tpu.memory_space<vmem>>, vector<1x32xf32>
    %cst_29 = arith.constant dense<0.000000e+00> : vector<8xf32>
    %51 = vector.multi_reduction <add>, %48, %cst_29 [1] : vector<8x32xf32> to vector<8xf32>
    %52 = vector.shape_cast %51 : vector<8xf32> to vector<8x1xf32>
    %cst_30 = arith.constant 3.200000e+01 : f32
    %53 = vector.broadcast %cst_30 : f32 to vector<8x1xf32>
    %54 = arith.divf %52, %53 : vector<8x1xf32>
    %55 = vector.broadcast %54 : vector<8x1xf32> to vector<8x32xf32>
    %56 = arith.subf %48, %55 : vector<8x32xf32>
    %57 = vector.broadcast %54 : vector<8x1xf32> to vector<8x32xf32>
    %58 = arith.subf %48, %57 : vector<8x32xf32>
    %59 = arith.mulf %56, %58 : vector<8x32xf32>
    %cst_31 = arith.constant dense<0.000000e+00> : vector<8xf32>
    %60 = vector.multi_reduction <add>, %59, %cst_31 [1] : vector<8x32xf32> to vector<8xf32>
    %61 = vector.shape_cast %60 : vector<8xf32> to vector<8x1xf32>
    %cst_32 = arith.constant 3.200000e+01 : f32
    %62 = vector.broadcast %cst_32 : f32 to vector<8x1xf32>
    %63 = arith.divf %61, %62 : vector<8x1xf32>
    %64 = vector.broadcast %54 : vector<8x1xf32> to vector<8x32xf32>
    %65 = arith.subf %48, %64 : vector<8x32xf32>
    %cst_33 = arith.constant 9.99999974E-6 : f32
    %66 = vector.broadcast %cst_33 : f32 to vector<8x1xf32>
    %67 = arith.addf %63, %66 : vector<8x1xf32>
    %68 = math.rsqrt %67 : vector<8x1xf32>
    %69 = vector.broadcast %68 : vector<8x1xf32> to vector<8x32xf32>
    %70 = arith.mulf %65, %69 : vector<8x32xf32>
    %71 = vector.broadcast %49 : vector<1x32xf32> to vector<8x32xf32>
    %72 = arith.mulf %70, %71 : vector<8x32xf32>
    %73 = vector.broadcast %50 : vector<1x32xf32> to vector<8x32xf32>
    %74 = arith.addf %72, %73 : vector<8x32xf32>
    %75 = arith.truncf %74 : vector<8x32xf32> to vector<8x32xbf16>
    %c0_34 = arith.constant 0 : index
    %c0_35 = arith.constant 0 : index
    %c0_36 = arith.constant 0 : index
    %76 = vector.load %arg11[%c0_34, %c0_35, %c0_36] : memref<1x8x32xbf16, #tpu.memory_space<vmem>>, vector<1x8x32xbf16>
    %77 = vector.shape_cast %76 : vector<1x8x32xbf16> to vector<8x32xbf16>
    %78 = vector.shape_cast %75 : vector<8x32xbf16> to vector<1x8x32xbf16>
    tpu.vector_store %arg11[%c0_34, %c0_35, %c0_36], %78 {strides = array<i32>} : memref<1x8x32xbf16, #tpu.memory_space<vmem>>, vector<1x8x32xbf16>,
    return
  }
  func.func @transform_0(%arg0: i32) -> (i32, i32, i32) {
    %c0_i32 = arith.constant 0 : i32
    %c0_i32_0 = arith.constant 0 : i32
    %c0_i32_1 = arith.constant 0 : i32
    return %arg0, %c0_i32, %c0_i32_0 : i32, i32, i32
  }
  func.func @transform_1(%arg0: i32) -> (i32, i32, i32) {
    %c0_i32 = arith.constant 0 : i32
    %c0_i32_0 = arith.constant 0 : i32
    %c0_i32_1 = arith.constant 0 : i32
    return %arg0, %c0_i32, %c0_i32_0 : i32, i32, i32
  }
  func.func @transform_2(%arg0: i32) -> (i32, i32) {
    %c0_i32 = arith.constant 0 : i32
    %c0_i32_0 = arith.constant 0 : i32
    %c0_i32_1 = arith.constant 0 : i32
    return %c0_i32, %c0_i32_0 : i32, i32
  }
  func.func @transform_3(%arg0: i32) -> (i32, i32) {
    %c0_i32 = arith.constant 0 : i32
    %c0_i32_0 = arith.constant 0 : i32
    %c0_i32_1 = arith.constant 0 : i32
    return %c0_i32, %c0_i32_0 : i32, i32
  }
  func.func @transform_4(%arg0: i32) -> (i32, i32) {
    %c0_i32 = arith.constant 0 : i32
    %c0_i32_0 = arith.constant 0 : i32
    %c0_i32_1 = arith.constant 0 : i32
    return %c0_i32, %c0_i32_0 : i32, i32
  }
  func.func @transform_5(%arg0: i32) -> (i32, i32) {
    %c0_i32 = arith.constant 0 : i32
    %c0_i32_0 = arith.constant 0 : i32
    %c0_i32_1 = arith.constant 0 : i32
    return %c0_i32, %c0_i32_0 : i32, i32
  }
  func.func @transform_6(%arg0: i32) -> (i32, i32, i32) {
    %c0_i32 = arith.constant 0 : i32
    %c0_i32_0 = arith.constant 0 : i32
    %c0_i32_1 = arith.constant 0 : i32
    %c0_i32_2 = arith.constant 0 : i32
    return %c0_i32, %c0_i32_0, %c0_i32_1 : i32, i32, i32
  }
  func.func @transform_7(%arg0: i32) -> (i32, i32) {
    %c0_i32 = arith.constant 0 : i32
    %c0_i32_0 = arith.constant 0 : i32
    %c0_i32_1 = arith.constant 0 : i32
    return %c0_i32, %c0_i32_0 : i32, i32
  }
  func.func @transform_8(%arg0: i32) -> (i32, i32) {
    %c0_i32 = arith.constant 0 : i32
    %c0_i32_0 = arith.constant 0 : i32
    %c0_i32_1 = arith.constant 0 : i32
    return %c0_i32, %c0_i32_0 : i32, i32
  }
  func.func @transform_9(%arg0: i32) -> (i32, i32) {
    %c0_i32 = arith.constant 0 : i32
    %c0_i32_0 = arith.constant 0 : i32
    %c0_i32_1 = arith.constant 0 : i32
    return %c0_i32, %c0_i32_0 : i32, i32
  }
  func.func @transform_10(%arg0: i32) -> (i32, i32, i32) {
    %c0_i32 = arith.constant 0 : i32
    %c0_i32_0 = arith.constant 0 : i32
    %c0_i32_1 = arith.constant 0 : i32
    return %arg0, %c0_i32, %c0_i32_0 : i32, i32, i32
  }
}

module attributes {stable_mosaic.version = 11 : i64} {
  func.func @_self_attn_kernel(%arg0: i32, %arg1: memref<1x8x32xf32, #tpu.memory_space<vmem>>, %arg2: memref<32x32xbf16, #tpu.memory_space<vmem>>, %arg3: memref<1x32xf32, #tpu.memory_space<vmem>>, %arg4: memref<32x64xbf16, #tpu.memory_space<vmem>>, %arg5: memref<1x64xf32, #tpu.memory_space<vmem>>, %arg6: memref<4x8x32xbf16, #tpu.memory_space<vmem>>, %arg7: memref<1x32xf32, #tpu.memory_space<vmem>>, %arg8: memref<1x32xf32, #tpu.memory_space<vmem>>, %arg9: memref<1x32xf32, #tpu.memory_space<vmem>>, %arg10: memref<1x8x32xbf16, #tpu.memory_space<vmem>>) attributes {dimension_semantics = [#tpu.dimension_semantics<parallel>], iteration_bounds = array<i64: 2>, scalar_prefetch = 0 : i64, scratch_operands = 0 : i64, tpu.core_type = #tpu.core_type<tc>, window_params = [{transform_indices = @transform_0, window_bounds = array<i64: 1, 8, 32>}, {pipeline_mode = #tpu.pipeline_mode<synchronous>, transform_indices = @transform_1, window_bounds = array<i64: 32, 32>}, {pipeline_mode = #tpu.pipeline_mode<synchronous>, transform_indices = @transform_2, window_bounds = array<i64: 1, 32>}, {pipeline_mode = #tpu.pipeline_mode<synchronous>, transform_indices = @transform_3, window_bounds = array<i64: 32, 64>}, {pipeline_mode = #tpu.pipeline_mode<synchronous>, transform_indices = @transform_4, window_bounds = array<i64: 1, 64>}, {pipeline_mode = #tpu.pipeline_mode<synchronous>, transform_indices = @transform_5, window_bounds = array<i64: 4, 8, 32>}, {pipeline_mode = #tpu.pipeline_mode<synchronous>, transform_indices = @transform_6, window_bounds = array<i64: 1, 32>}, {pipeline_mode = #tpu.pipeline_mode<synchronous>, transform_indices = @transform_7, window_bounds = array<i64: 1, 32>}, {pipeline_mode = #tpu.pipeline_mode<synchronous>, transform_indices = @transform_8, window_bounds = array<i64: 1, 32>}, {transform_indices = @transform_9, window_bounds = array<i64: 1, 8, 32>}]} {
    %c0 = arith.constant 0 : index
    %c0_0 = arith.constant 0 : index
    %c0_1 = arith.constant 0 : index
    %0 = vector.load %arg1[%c0, %c0_0, %c0_1] : memref<1x8x32xf32, #tpu.memory_space<vmem>>, vector<1x8x32xf32>
    %1 = vector.shape_cast %0 : vector<1x8x32xf32> to vector<8x32xf32>
    %2 = arith.truncf %1 : vector<8x32xf32> to vector<8x32xbf16>
    %c0_2 = arith.constant 0 : index
    %c0_3 = arith.constant 0 : index
    %3 = vector.load %arg2[%c0_2, %c0_3] : memref<32x32xbf16, #tpu.memory_space<vmem>>, vector<32x32xbf16>
    %cst = arith.constant dense<0.000000e+00> : vector<8x32xf32>
    %4 = tpu.matmul %2, %3, %cst {dimension_numbers = #tpu.dot_dimension_numbers<[1], [0], [0], [1], [0, 0, 1, 1], [], []>} : vector<8x32xbf16>, vector<32x32xbf16>, vector<8x32xf32> -> vector<8x32xf32>
    %c0_4 = arith.constant 0 : index
    %c0_5 = arith.constant 0 : index
    %5 = vector.load %arg3[%c0_4, %c0_5] : memref<1x32xf32, #tpu.memory_space<vmem>>, vector<1x32xf32>
    %6 = vector.broadcast %5 : vector<1x32xf32> to vector<8x32xf32>
    %7 = arith.addf %4, %6 : vector<8x32xf32>
    %8 = arith.truncf %1 : vector<8x32xf32> to vector<8x32xbf16>
    %c0_6 = arith.constant 0 : index
    %c0_7 = arith.constant 0 : index
    %9 = vector.load %arg4[%c0_6, %c0_7] : memref<32x64xbf16, #tpu.memory_space<vmem>>, vector<32x64xbf16>
    %cst_8 = arith.constant dense<0.000000e+00> : vector<8x64xf32>
    %10 = tpu.matmul %8, %9, %cst_8 {dimension_numbers = #tpu.dot_dimension_numbers<[1], [0], [0], [1], [0, 0, 1, 1], [], []>} : vector<8x32xbf16>, vector<32x64xbf16>, vector<8x64xf32> -> vector<8x64xf32>
    %c0_9 = arith.constant 0 : index
    %c0_10 = arith.constant 0 : index
    %11 = vector.load %arg5[%c0_9, %c0_10] : memref<1x64xf32, #tpu.memory_space<vmem>>, vector<1x64xf32>
    %12 = vector.broadcast %11 : vector<1x64xf32> to vector<8x64xf32>
    %13 = arith.addf %10, %12 : vector<8x64xf32>
    %14 = vector.shape_cast %7 : vector<8x32xf32> to vector<8x4x8xf32>
    %15 = tpu.transpose %14, [1, 0, 2] : vector<8x4x8xf32> -> vector<4x8x8xf32>
    %16 = arith.truncf %15 : vector<4x8x8xf32> to vector<4x8x8xbf16>
    %17 = vector.extract_strided_slice %13 {offsets = [0, 0], sizes = [8, 32], strides = [1, 1]} : vector<8x64xf32> to vector<8x32xf32>
    %18 = vector.shape_cast %17 : vector<8x32xf32> to vector<8x4x8xf32>
    %19 = tpu.transpose %18, [1, 0, 2] : vector<8x4x8xf32> -> vector<4x8x8xf32>
    %20 = arith.truncf %19 : vector<4x8x8xf32> to vector<4x8x8xbf16>
    %21 = vector.extract_strided_slice %13 {offsets = [0, 32], sizes = [8, 32], strides = [1, 1]} : vector<8x64xf32> to vector<8x32xf32>
    %22 = vector.shape_cast %21 : vector<8x32xf32> to vector<8x4x8xf32>
    %23 = tpu.transpose %22, [1, 0, 2] : vector<8x4x8xf32> -> vector<4x8x8xf32>
    %24 = arith.truncf %23 : vector<4x8x8xf32> to vector<4x8x8xbf16>
    "tpu.trace_start"() <{level = 10 : i32, message = "hqe,hke->hqk"}> : () -> ()
    %cst_11 = arith.constant dense<0.000000e+00> : vector<4x8x8xf32>
    %25 = tpu.matmul %16, %20, %cst_11 {dimension_numbers = #tpu.dot_dimension_numbers<[2], [2], [1], [1], [0, 0, 0, 1, 1, 1], [0], [0]>} : vector<4x8x8xbf16>, vector<4x8x8xbf16>, vector<4x8x8xf32> -> vector<4x8x8xf32>
    "tpu.trace_stop"() : () -> ()
    %26 = tpu.iota {dimensions = array<i32: 0>} : vector<8x8xi32>
    %27 = tpu.iota {dimensions = array<i32: 1>} : vector<8x8xi32>
    %28 = arith.cmpi sgt, %27, %26 : vector<8x8xi32>
    %cst_12 = arith.constant -1.000000e+30 : f32
    %29 = vector.shape_cast %28 : vector<8x8xi1> to vector<1x8x8xi1>
    %30 = vector.broadcast %29 : vector<1x8x8xi1> to vector<4x8x8xi1>
    %31 = vector.broadcast %cst_12 : f32 to vector<4x8x8xf32>
    %32 = arith.select %30, %31, %25 : vector<4x8x8xi1>, vector<4x8x8xf32>
    %cst_13 = arith.constant dense<0xFF800000> : vector<4x8xf32>
    %33 = vector.multi_reduction <maximumf>, %32, %cst_13 [2] : vector<4x8x8xf32> to vector<4x8xf32>
    %34 = vector.shape_cast %33 : vector<4x8xf32> to vector<4x8x1xf32>
    %35 = vector.broadcast %34 : vector<4x8x1xf32> to vector<4x8x8xf32>
    %36 = arith.subf %32, %35 : vector<4x8x8xf32>
    %37 = math.exp %36 : vector<4x8x8xf32>
    %cst_14 = arith.constant dense<0.000000e+00> : vector<4x8xf32>
    %38 = vector.multi_reduction <add>, %37, %cst_14 [2] : vector<4x8x8xf32> to vector<4x8xf32>
    %39 = vector.shape_cast %38 : vector<4x8xf32> to vector<4x8x1xf32>
    %40 = tpu.reciprocal %39 {approx = true} : vector<4x8x1xf32> -> vector<4x8x1xf32>
    %41 = vector.broadcast %40 : vector<4x8x1xf32> to vector<4x8x8xf32>
    %42 = arith.mulf %37, %41 : vector<4x8x8xf32>
    %43 = arith.truncf %42 : vector<4x8x8xf32> to vector<4x8x8xbf16>
    "tpu.trace_start"() <{level = 10 : i32, message = "hqk,hke->hqe"}> : () -> ()
    %cst_15 = arith.constant dense<0.000000e+00> : vector<4x8x8xf32>
    %44 = tpu.matmul %43, %24, %cst_15 {dimension_numbers = #tpu.dot_dimension_numbers<[2], [1], [1], [2], [0, 0, 0, 1, 1, 2], [0], [0]>} : vector<4x8x8xbf16>, vector<4x8x8xbf16>, vector<4x8x8xf32> -> vector<4x8x8xf32>
    "tpu.trace_stop"() : () -> ()
    %45 = arith.truncf %44 : vector<4x8x8xf32> to vector<4x8x8xbf16>
    %c0_16 = arith.constant 0 : index
    %c0_17 = arith.constant 0 : index
    %c0_18 = arith.constant 0 : index
    %46 = vector.load %arg6[%c0_16, %c0_17, %c0_18] : memref<4x8x32xbf16, #tpu.memory_space<vmem>>, vector<4x8x32xbf16>
    "tpu.trace_start"() <{level = 10 : i32, message = "hqe,hed->hqd"}> : () -> ()
    %cst_19 = arith.constant dense<0.000000e+00> : vector<4x8x32xf32>
    %47 = tpu.matmul %45, %46, %cst_19 {dimension_numbers = #tpu.dot_dimension_numbers<[2], [1], [1], [2], [0, 0, 0, 1, 1, 2], [0], [0]>} : vector<4x8x8xbf16>, vector<4x8x32xbf16>, vector<4x8x32xf32> -> vector<4x8x32xf32>
    "tpu.trace_stop"() : () -> ()
    %cst_20 = arith.constant dense<0.000000e+00> : vector<8x32xf32>
    %48 = vector.multi_reduction <add>, %47, %cst_20 [0] : vector<4x8x32xf32> to vector<8x32xf32>
    %c0_21 = arith.constant 0 : index
    %c0_22 = arith.constant 0 : index
    %49 = vector.load %arg7[%c0_21, %c0_22] : memref<1x32xf32, #tpu.memory_space<vmem>>, vector<1x32xf32>
    %50 = vector.broadcast %49 : vector<1x32xf32> to vector<8x32xf32>
    %51 = arith.addf %48, %50 : vector<8x32xf32>
    %52 = arith.addf %1, %51 : vector<8x32xf32>
    %c0_23 = arith.constant 0 : index
    %c0_24 = arith.constant 0 : index
    %53 = vector.load %arg8[%c0_23, %c0_24] : memref<1x32xf32, #tpu.memory_space<vmem>>, vector<1x32xf32>
    %c0_25 = arith.constant 0 : index
    %c0_26 = arith.constant 0 : index
    %54 = vector.load %arg9[%c0_25, %c0_26] : memref<1x32xf32, #tpu.memory_space<vmem>>, vector<1x32xf32>
    %cst_27 = arith.constant dense<0.000000e+00> : vector<8xf32>
    %55 = vector.multi_reduction <add>, %52, %cst_27 [1] : vector<8x32xf32> to vector<8xf32>
    %56 = vector.shape_cast %55 : vector<8xf32> to vector<8x1xf32>
    %cst_28 = arith.constant 3.200000e+01 : f32
    %57 = vector.broadcast %cst_28 : f32 to vector<8x1xf32>
    %58 = arith.divf %56, %57 : vector<8x1xf32>
    %59 = vector.broadcast %58 : vector<8x1xf32> to vector<8x32xf32>
    %60 = arith.subf %52, %59 : vector<8x32xf32>
    %61 = vector.broadcast %58 : vector<8x1xf32> to vector<8x32xf32>
    %62 = arith.subf %52, %61 : vector<8x32xf32>
    %63 = arith.mulf %60, %62 : vector<8x32xf32>
    %cst_29 = arith.constant dense<0.000000e+00> : vector<8xf32>
    %64 = vector.multi_reduction <add>, %63, %cst_29 [1] : vector<8x32xf32> to vector<8xf32>
    %65 = vector.shape_cast %64 : vector<8xf32> to vector<8x1xf32>
    %cst_30 = arith.constant 3.200000e+01 : f32
    %66 = vector.broadcast %cst_30 : f32 to vector<8x1xf32>
    %67 = arith.divf %65, %66 : vector<8x1xf32>
    %68 = vector.broadcast %58 : vector<8x1xf32> to vector<8x32xf32>
    %69 = arith.subf %52, %68 : vector<8x32xf32>
    %cst_31 = arith.constant 9.99999974E-6 : f32
    %70 = vector.broadcast %cst_31 : f32 to vector<8x1xf32>
    %71 = arith.addf %67, %70 : vector<8x1xf32>
    %72 = math.rsqrt %71 : vector<8x1xf32>
    %73 = vector.broadcast %72 : vector<8x1xf32> to vector<8x32xf32>
    %74 = arith.mulf %69, %73 : vector<8x32xf32>
    %75 = vector.broadcast %53 : vector<1x32xf32> to vector<8x32xf32>
    %76 = arith.mulf %74, %75 : vector<8x32xf32>
    %77 = vector.broadcast %54 : vector<1x32xf32> to vector<8x32xf32>
    %78 = arith.addf %76, %77 : vector<8x32xf32>
    %79 = arith.truncf %78 : vector<8x32xf32> to vector<8x32xbf16>
    %c0_32 = arith.constant 0 : index
    %c0_33 = arith.constant 0 : index
    %c0_34 = arith.constant 0 : index
    %80 = vector.load %arg10[%c0_32, %c0_33, %c0_34] : memref<1x8x32xbf16, #tpu.memory_space<vmem>>, vector<1x8x32xbf16>
    %81 = vector.shape_cast %80 : vector<1x8x32xbf16> to vector<8x32xbf16>
    %82 = vector.shape_cast %79 : vector<8x32xbf16> to vector<1x8x32xbf16>
    tpu.vector_store %arg10[%c0_32, %c0_33, %c0_34], %82 {strides = array<i32>} : memref<1x8x32xbf16, #tpu.memory_space<vmem>>, vector<1x8x32xbf16>,
    return
  }
  func.func @transform_0(%arg0: i32) -> (i32, i32, i32) {
    %c0_i32 = arith.constant 0 : i32
    %c0_i32_0 = arith.constant 0 : i32
    %c0_i32_1 = arith.constant 0 : i32
    return %arg0, %c0_i32, %c0_i32_0 : i32, i32, i32
  }
  func.func @transform_1(%arg0: i32) -> (i32, i32) {
    %c0_i32 = arith.constant 0 : i32
    %c0_i32_0 = arith.constant 0 : i32
    %c0_i32_1 = arith.constant 0 : i32
    return %c0_i32, %c0_i32_0 : i32, i32
  }
  func.func @transform_2(%arg0: i32) -> (i32, i32) {
    %c0_i32 = arith.constant 0 : i32
    %c0_i32_0 = arith.constant 0 : i32
    %c0_i32_1 = arith.constant 0 : i32
    return %c0_i32, %c0_i32_0 : i32, i32
  }
  func.func @transform_3(%arg0: i32) -> (i32, i32) {
    %c0_i32 = arith.constant 0 : i32
    %c0_i32_0 = arith.constant 0 : i32
    %c0_i32_1 = arith.constant 0 : i32
    return %c0_i32, %c0_i32_0 : i32, i32
  }
  func.func @transform_4(%arg0: i32) -> (i32, i32) {
    %c0_i32 = arith.constant 0 : i32
    %c0_i32_0 = arith.constant 0 : i32
    %c0_i32_1 = arith.constant 0 : i32
    return %c0_i32, %c0_i32_0 : i32, i32
  }
  func.func @transform_5(%arg0: i32) -> (i32, i32, i32) {
    %c0_i32 = arith.constant 0 : i32
    %c0_i32_0 = arith.constant 0 : i32
    %c0_i32_1 = arith.constant 0 : i32
    %c0_i32_2 = arith.constant 0 : i32
    return %c0_i32, %c0_i32_0, %c0_i32_1 : i32, i32, i32
  }
  func.func @transform_6(%arg0: i32) -> (i32, i32) {
    %c0_i32 = arith.constant 0 : i32
    %c0_i32_0 = arith.constant 0 : i32
    %c0_i32_1 = arith.constant 0 : i32
    return %c0_i32, %c0_i32_0 : i32, i32
  }
  func.func @transform_7(%arg0: i32) -> (i32, i32) {
    %c0_i32 = arith.constant 0 : i32
    %c0_i32_0 = arith.constant 0 : i32
    %c0_i32_1 = arith.constant 0 : i32
    return %c0_i32, %c0_i32_0 : i32, i32
  }
  func.func @transform_8(%arg0: i32) -> (i32, i32) {
    %c0_i32 = arith.constant 0 : i32
    %c0_i32_0 = arith.constant 0 : i32
    %c0_i32_1 = arith.constant 0 : i32
    return %c0_i32, %c0_i32_0 : i32, i32
  }
  func.func @transform_9(%arg0: i32) -> (i32, i32, i32) {
    %c0_i32 = arith.constant 0 : i32
    %c0_i32_0 = arith.constant 0 : i32
    %c0_i32_1 = arith.constant 0 : i32
    return %arg0, %c0_i32, %c0_i32_0 : i32, i32, i32
  }
}

</mosaic_0001>

<bundles_post_ra>
// kernel: decoder_layer.5
= control target key start
LH: loop header
LB: loop body
LE: loop exit
PB: predicated region body
PF: predicated region fallthrough
CT: control target
= control target key end

     0   :  { %s384_s0 = inlined_call_operand.vmem [shape: bf16[16,32], index: 0, kind: input, shape index: {}]   ;;  %s385_s1 = inlined_call_operand.vmem [shape: bf16[32,64], index: 1, kind: input, shape index: {}]   ;;  %s386_s2 = inlined_call_operand.vmem [shape: f32[1,64], index: 2, kind: input, shape index: {}]   ;;  %s387_s3 = inlined_call_operand.vmem [shape: bf16[64,32], index: 3, kind: input, shape index: {}]   ;;  %s388_s4 = inlined_call_operand.vmem [shape: f32[1,32], index: 4, kind: input, shape index: {}]   ;;  %s389_s5 = inlined_call_operand.vmem [shape: f32[1,32], index: 5, kind: input, shape index: {}]   ;;  %s390_s6 = inlined_call_operand.vmem [shape: f32[1,32], index: 6, kind: input, shape index: {}]   ;;  %s391_s7 = inlined_call_operand.hbm [shape: f32[16,32], index: 7, kind: output, shape index: {}]  }
   0x1   :  { %v249_v0 = vld [vmem:[%s385_s1 + $0x8] sm:$0xff]  ;;  %v248_v1 = vld [vmem:[%s385_s1] sm:$0xff] }
   0x2   :  { %65 = vmatpush.bf16.msra.mxu0 %v249_v0 }
   0x3   :  { %12 = vsyncpa [#allocation3], 0  ;;  %v247_v2 = vld [vmem:[%s384_s0] sm:$0xff]  ;;  %vm55_vm0 = vcmask 261120   ;;  %v253_v3 = vld [vmem:[%s387_s3 + $0x18] sm:$0xff]  ;;  %vm112_vm1 = vcmask 523264  }
   0x4   :  { %120 = vmatpush.bf16.msra.mxu1 %v253_v3  ;;  %v252_v4 = vld [vmem:[%s387_s3 + $0x10] sm:$0xff]  ;;  %v251_v5 = vld [vmem:[%s387_s3 + $0x8] sm:$0xff]  ;;  %v250_v6 = vld [vmem:[%s387_s3] sm:$0xff]  ;;  %v294_v27 = vmov 32.0   ;;  %s205_s23 = sshll.u32 %s391_s7, 4  ;;  %s297_s24 = smov 8   ;;  %s206_s23 = int_to_ptr.hbm [resolvable:$true] %s205_s23 }
   0x5   :  { %v258_v8 = vld [vmem:[%s386_s2] ss:$0 sm:$0xff]  ;;  %262 = vrcp.f32 %v294_v27 }
   0x6   :  { %66 = vmatpush.bf16.msra.mxu0 %v248_v1  ;;  %v28_v15 = vld [vmem:[%s384_s0] sm:$0xff]  }
   0x7   :  { %v259_v16 = vld [vmem:[%s388_s4] ss:$0 sm:$0xff]  ;;  %v130_v17 = vunpack.c.l.bf16 %v28_v15  ;;  %v131_v22 = vunpack.c.h.bf16 %v28_v15 }
   0x8   :  { %121 = vmatpush.bf16.msra.mxu1 %v252_v4  ;;  %v260_v58 = vld [vmem:[%s389_s5] ss:$0 sm:$0xff]  ;;  %s295_s5 = smov [#allocation2]  }
   0x9   :  { %229 = vmatmul.msk.bf16.vlgmr.msra.gmra.mxu0 %vm55_vm0, %v247_v2  ;;  %v261_v62 = vld [vmem:[%s390_s6] ss:$0 sm:$0xff]  ;;  %s203_s20 = sshll.u32 %s295_s5, 4  ;;  %s296_s6 = smov 128   ;;  %s204_s20 = int_to_ptr.vmem [resolvable:$true] %s203_s20 }
   0xb   :  { %v263_v28 = vpop.eup %262 }
   0xc   :  { %122 = vmatpush.bf16.msra.mxu1 %v251_v5  ;;  %v143_v29 = vmul.f32 32.0, %v263_v28  ;;  %vm147_vm2 = vweird.f32 %v263_v28 }
   0xe   :  { %v144_v30 = vsub.f32 1.0, %v143_v29 }
  0x10   :  { %123 = vmatpush.bf16.msra.mxu1 %v250_v6  ;;  %v145_v31 = vmul.f32 %v263_v28, %v144_v30 }
  0x12   :  { %v146_v32 = vadd.f32 %v263_v28, %v145_v31 }
  0x14   :  { %v148_v33 = vsel %vm147_vm2, %v263_v28, %v146_v32 }
  0x86   :  { %v68_v7 = vpop.f32.mrf.mxu0 }
  0x87   :  { %v69_v9 = vadd.f32 %v258_v8, %v68_v7 }
  0x89   :  { %v73_v12 = vmax.f32 %v69_v9, 0.0 }
  0x8e   :  { %v70_v10 = vpop.f32.mrf.mxu0 }
  0x8f   :  { %v71_v11 = vadd.f32 %v258_v8, %v70_v10 }
  0x91   :  { %v74_v13 = vmax.f32 %v71_v11, 0.0 }
  0x93   :  { %v75_v14 = vpack.c.bf16 %v74_v13, %v73_v12 }
  0x95   :  { %246 = vmatmul.msk.bf16.vlgmr.msra.gmra.mxu1 %vm112_vm1, %v75_v14 }
 0x112   :  { %v125_v18 = vpop.f32.mrf.mxu1 }
 0x113   :  { %v126_v19 = vadd.f32 %v259_v16, %v125_v18 }
 0x115   :  { %v132_v20 = vadd.f32 %v130_v17, %v126_v19 }
 0x117   :  { %v136_v21 = vsel %vm55_vm0, %v132_v20, 0.0 }
 0x118   :  { %137 = vadd.xlane.f32.xlu0 %v136_v21 }
 0x11a   :  { %v127_v23 = vpop.f32.mrf.mxu1 }
 0x11b   :  { %v128_v24 = vadd.f32 %v259_v16, %v127_v23 }
 0x11d   :  { %v133_v25 = vadd.f32 %v131_v22, %v128_v24 }
 0x11f   :  { %v139_v26 = vsel %vm55_vm0, %v133_v25, 0.0 }
 0x120   :  { %140 = vadd.xlane.f32.xlu0 %v139_v26 }
 0x18b   :  { %v138_v34 = vpop.xlane.xlu0 %137 }
 0x18c   :  { %v149_v35 = vmul.f32 %v148_v33, %v138_v34 }
 0x18e   :  { %v151_v36 = vsub.f32 %v132_v20, %v149_v35 }
 0x190   :  { %v153_v37 = vmul.f32 %v151_v36, %v151_v36 }
 0x192   :  { %v155_v38 = vsel %vm55_vm0, %v153_v37, 0.0 }
 0x193   :  { %156 = vadd.xlane.f32.xlu1 %v155_v38  ;;  %v141_v39 = vpop.xlane.xlu0 %140 }
 0x194   :  { %v150_v40 = vmul.f32 %v148_v33, %v141_v39 }
 0x196   :  { %v152_v41 = vsub.f32 %v133_v25, %v150_v40 }
 0x198   :  { %v154_v42 = vmul.f32 %v152_v41, %v152_v41 }
 0x19a   :  { %v158_v43 = vsel %vm55_vm0, %v154_v42, 0.0 }
 0x19b   :  { %159 = vadd.xlane.f32.xlu1 %v158_v43 }
 0x206   :  { %v157_v44 = vpop.xlane.xlu1 %156 }
 0x207   :  { %v161_v45 = vmul.f32 %v157_v44, %v148_v33 }
 0x209   :  { %v163_v46 = vadd.f32 1e-05, %v161_v45 }
 0x20b   :  { %264 = vrsqrt.f32 %v163_v46  ;;  %vm171_vm4 = vweird.f32 %v163_v46 }
 0x20e   :  { %v160_v47 = vpop.xlane.xlu1 %159 }
 0x20f   :  { %v162_v48 = vmul.f32 %v160_v47, %v148_v33 }
 0x211   :  { %v265_v49 = vpop.eup %264  ;;  %v164_v50 = vadd.f32 1e-05, %v162_v48 }
 0x212   :  { %v166_v51 = vmul.f32 %v265_v49, %v163_v46  ;;  %vm172_vm3 = vweird.f32 %v265_v49 }
 0x213   :  { %266 = vrsqrt.f32 %v164_v50  ;;  %vm173_vm5 = vmor %vm171_vm4, %vm172_vm3  ;;  %vm181_vm7 = vweird.f32 %v164_v50 }
 0x214   :  { %v167_v52 = vmul.f32 %v265_v49, %v166_v51 }
 0x216   :  { %v168_v53 = vmul.f32 0.5, %v167_v52 }
 0x218   :  { %v169_v54 = vsub.f32 1.5, %v168_v53 }
 0x219   :  { %v267_v55 = vpop.eup %266 }
 0x21a   :  { %v170_v56 = vmul.f32 %v265_v49, %v169_v54  ;;  %v176_v57 = vmul.f32 %v267_v55, %v164_v50  ;;  %vm182_vm6 = vweird.f32 %v267_v55 }
 0x21b   :  { %vm183_vm8 = vmor %vm181_vm7, %vm182_vm6 }
 0x21c   :  { %v174_v59 = vsel %vm173_vm5, %v265_v49, %v170_v56  ;;  %v177_v60 = vmul.f32 %v267_v55, %v176_v57 }
 0x21d   :  { %v185_v61 = vmul.f32 %v174_v59, %v151_v36 }
 0x21e   :  { %v178_v63 = vmul.f32 0.5, %v177_v60 }
 0x21f   :  { %v190_v0 = vmul.f32 %v260_v58, %v185_v61 }
 0x220   :  { %v179_v1 = vsub.f32 1.5, %v178_v63 }
 0x221   :  { %v195_v2 = vadd.f32 %v261_v62, %v190_v0 }
 0x222   :  { %v180_v3 = vmul.f32 %v267_v55, %v179_v1 }
 0x223   :  { %197 = vst.msk [vmem:[#allocation2] sm:$0xff] %vm55_vm0, %v195_v2 }
 0x224   :  { %v184_v4 = vsel %vm183_vm8, %v267_v55, %v180_v3 }
 0x225   :  { %v186_v5 = vmul.f32 %v184_v4, %v152_v41 }
 0x227   :  { %v191_v6 = vmul.f32 %v260_v58, %v186_v5 }
 0x229   :  { %v196_v7 = vadd.f32 %v261_v62, %v191_v6 }
 0x22b   :  { %198 = vst.msk [vmem:[#allocation2 + $0x8] sm:$0xff] %vm55_vm0, %v196_v7 }
 0x22c   :  { %211 = dma.vmem_to_hbm [thread:$0]  %s204_s20, 256, %s206_s23, [#allocation3], %s296_s6, %s296_s6, %s297_s24  }
 0x22d   :  { %292 = dma.done.wait [#allocation3], 256  }
 0x22e   :  { %293 = vsyncadd [#allocation3], 4294967040 }
 0x22f   :  { %216 = vsyncpa [#allocation3], 1 }

// kernel: decoder_layer.4
= control target key start
LH: loop header
LB: loop body
LE: loop exit
PB: predicated region body
PF: predicated region fallthrough
CT: control target
= control target key end

     0   :  { %15 = vsyncpa [#allocation3], 0  ;;  %s1900_s0 = inlined_call_operand.vmem [shape: bf16[2,8,32], index: 0, kind: input, shape index: {}]   ;;  %s1901_s1 = inlined_call_operand.vmem [shape: f32[2,8,32], index: 1, kind: input, shape index: {}]   ;;  %s1902_s2 = inlined_call_operand.hbm [shape: bf16[32,32], index: 2, kind: input, shape index: {}]   ;;  %s1903_s3 = inlined_call_operand.vmem [shape: f32[1,32], index: 3, kind: input, shape index: {}]   ;;  %s1904_s4 = inlined_call_operand.hbm [shape: bf16[32,64], index: 4, kind: input, shape index: {}]   ;;  %s1905_s5 = inlined_call_operand.vmem [shape: f32[1,64], index: 5, kind: input, shape index: {}]   ;;  %s1906_s6 = inlined_call_operand.hbm [shape: bf16[4,8,32], index: 6, kind: input, shape index: {}]   ;;  %s1907_s7 = inlined_call_operand.vmem [shape: f32[1,32], index: 7, kind: input, shape index: {}]   ;;  %s1908_s8 = inlined_call_operand.vmem [shape: f32[1,32], index: 8, kind: input, shape index: {}]   ;;  %s1909_s9 = inlined_call_operand.vmem [shape: f32[1,32], index: 9, kind: input, shape index: {}]   ;;  %s1910_s10 = inlined_call_operand.vmem [shape: bf16[2,8,32], index: 10, kind: output, shape index: {}]  }
   0x1   :  { %16 = vsyncpa [#allocation5], 0  ;;  %s1618_s13 = smov 0  }
   0x2 LB: > { %s1624_s14 = sadd.s32 4294967295, %s1549_s13   ;;  %p1314_p0 = scmp.ge.s32.totalorder %s1549_s13, 1  ;;  %s1549_s13 = sphi %s1618_s13, %s22_s13  }
   0x3   : > { %p273_p1 = scmp.lt.s32.totalorder %s1549_s13, 3  ;;  %p1384_p2 = scmp.eq.s32.totalorder %s1624_s14, 0 }
   0x4   : > { %s301_s17 = sshll.u32 %s1904_s4, 4  ;;  %s284_s21 = sshll.u32 %s1902_s2, 4  ;;  %s302_s17 = int_to_ptr.hbm [resolvable:$true] %s301_s17  ;;  %s285_s21 = int_to_ptr.hbm [resolvable:$true] %s284_s21 }
   0x5   : > { %p1632_p3 = pnand %p1314_p0, %p273_p1  ;;  %s1551_s22 = smov [#allocation4]  }
   0x6   : > { %s303_s23 = sshll.u32 %s1551_s22, 4  ;;  %s1552_s24 = smov [#allocation2]   ;;  %s304_s23 = int_to_ptr.vmem [resolvable:$true] %s303_s23 }
   0x7   : > { %p1374_p4 = pneg %p1632_p3  ;;  %s286_s25 = sshll.u32 %s1552_s24, 4  ;;  %s287_s25 = int_to_ptr.vmem [resolvable:$true] %s286_s25 }
   0x8   : > { %s318_s28 = sshll.u32 %s1906_s6, 4  ;;  %s1553_s29 = smov 64   ;;  %s319_s28 = int_to_ptr.hbm [resolvable:$true] %s318_s28 }
   0x9   : > { %p1375_p5 = pnand %p1384_p2, %p1374_p4  ;;  %s1554_s30 = smov 4  }
   0xa   : > { %s1555_s11 = smov [#allocation6]   ;;  %359 = sbr.rel (%p1632_p3) target bundleno = 1258 (0x4ea), region = 60 }
   0xb   : > { %1380 = dma.hbm_to_vmem [thread:$0]  (!%p1375_p5), %s302_s17, 256, %s304_s23, [#allocation5], %s1553_s29, %s1553_s29, %s1554_s30  }
   0xc   : > { %1377 = dma.hbm_to_vmem [thread:$0]  (!%p1375_p5), %s285_s21, 256, %s287_s25, [#allocation3], %s1553_s29, %s1553_s29, %s1554_s30  }
   0xd   : > { %s320_s12 = sshll.u32 %s1555_s11, 4  ;;  %s321_s12 = int_to_ptr.vmem [resolvable:$true] %s320_s12 }
   0xe   : > { %1383 = dma.hbm_to_vmem [thread:$0]  (!%p1375_p5), %s319_s28, 256, %s321_s12, [#allocation5], %s1553_s29, %s1553_s29, %s1554_s30  }
   0xf   : > { %1540 = dma.done.wait (%p1384_p2), [#allocation3], 256  }
  0x10   : > { %1542 = vsyncadd (%p1384_p2), [#allocation3], 4294967040 }
  0x11   : > { %1544 = dma.done.wait (%p1384_p2), [#allocation5], 512  }
  0x12   : > { %1546 = vsyncadd (%p1384_p2), [#allocation5], 4294966784  ;;  %p410_p6 = scmp.lt.s32.totalorder %s1624_s14, 1  ;;  %v1361_v0 = vld [vmem:[#allocation4 + $0x8] sm:$0xff]  ;;  %v1359_v1 = vld [vmem:[#allocation2 + $0x8] sm:$0xff]  ;;  %vm446_vm0 = vcmask 261120  }
  0x13   : > { %v1360_v2 = vld [vmem:[#allocation4] sm:$0xff]  ;;  %493 = vmatpush.bf16.msra.mxu1 %v1361_v0  ;;  %456 = vmatpush.bf16.msra.mxu0 %v1359_v1  ;;  %v1358_v4 = vld [vmem:[#allocation2] sm:$0xff]  ;;  %s1556_s27 = smov 104   ;;  %s1557_s28 = smov 112   ;;  %v1559_v17 = vmov 1983009808  }
  0x14   : > { %s1913_s14 = smov (!%p410_p6, %s1624_s14), 1  ;;  %v1420_v7 = vld [vmem:[%s1905_s5] ss:$0 sm:$0xff]  ;;  %s1558_s29 = smov 120   ;;  %v516_v18 = vunpack.c.l.s4 %v1559_v17  ;;  %vm511_vm1 = vcmask 1047556   ;;  %vm875_vm2 = vcmask 64512  }
  0x15   : > { %s1324_s15 = sshll.u32 %s1913_s14, 3  ;;  %s1323_s19 = sshll.u32 %s1913_s14, 2  ;;  %v1421_v8 = vld [vmem:[%s1903_s3] ss:$0 sm:$0xff]  ;;  %v1560_v30 = vmov 1934713408  }
  0x16   : > { %s417_s18 = scalar_lea.vmem %s1901_s1, %s1324_s15  ;;  %s413_s22 = scalar_lea.vmem %s1900_s0, %s1323_s19  ;;  %v1690_v23 = vunpack.c.0.s8 %v516_v18  ;;  %v540_v31 = vunpack.c.l.s4 %v1560_v30  ;;  %vm1003_vm3 = vcmask 1043456   ;;  %vm1214_vm8 = vcmask 257024  }
  0x17   : > { %v425_v3 = vld [vmem:[%s417_s18] sm:$0xff]  ;;  %494 = vmatpush.bf16.msra.mxu1 %v1360_v2  ;;  %457 = vmatpush.bf16.msra.mxu0 %v1358_v4  ;;  %s1561_s30 = smov 96  }
  0x18   : > { %v463_v5 = vpack.c.bf16 %v425_v3, %v425_v3  ;;  %v1670_v6 = vld [vmem:[%s413_s22] sm:$0xf]  ;;  %v1705_v37 = vunpack.c.0.s8 %v540_v31  ;;  %s421_s22 = scalar_lea.vmem %s1910_s10, %s1323_s19 }
  0x1a   : > { %1343 = vmatmul.msk.bf16.vlgmr.msra.gmra.mxu1 %vm446_vm0, %v463_v5  ;;  %1334 = vmatmul.msk.bf16.vlgmr.msra.gmra.mxu0 %vm446_vm0, %v1670_v6 }
  0x97   : > { %v496_v9 = vpop.f32.mrf.mxu1  ;;  %v459_v10 = vpop.f32.mrf.mxu0 }
  0x98   : > { %v1681_v11 = vadd.f32 %v1420_v7, %v496_v9  ;;  %v460_v12 = vadd.f32 %v1421_v8, %v459_v10 }
  0x9a   : > { %632 = vrot.lane.b32.xlu1 %v1681_v11, %s1556_s27  ;;  %629 = vrot.lane.b32.xlu0 %v1681_v11, %s1557_s28  ;;  %v637_v26 = vrot.slane %v1681_v11, 4  ;;  %v513_v40 = vrot.slane %v460_v12, 4 }
  0x9b   : > { %501 = vrot.lane.b32.xlu2 %v460_v12, %s1558_s29 }
  0x9f   : > { %v498_v13 = vpop.f32.mrf.mxu1  ;;  %v461_v14 = vpop.f32.mrf.mxu0 }
  0xa2   : > { %626 = vrot.lane.b32.xlu0 %v1681_v11, %s1558_s29  ;;  %504 = vrot.lane.b32.xlu1 %v460_v12, %s1557_s28 }
  0xa3   : > { %507 = vrot.lane.b32.xlu2 %v460_v12, %s1556_s27 }
  0xf5   : > { %v502_v15 = vpop.permute.xlu2 %501 }
  0xf6   : > { %v525_v19 = vrot.slane %v502_v15, 4 }
  0xfd   : > { %v508_v16 = vpop.permute.xlu2 %507 }
  0xfe   : > { %v523_v20 = vrot.slane %v508_v16, 4  ;;  %v526_v25 = vsel %vm511_vm1, %v508_v16, %v525_v19 }
  0xff   : > { %v534_v32 = vperm.slane %v526_v25, %v1690_v23 }
 0x100   : > { %v524_v27 = vsel %vm511_vm1, %v523_v20, %v502_v15 }
 0x101   : > { %v530_v33 = vperm.slane %v524_v27, %v1690_v23  ;;  %v547_v41 = vrot.slane %v534_v32, 4 }
 0x103   : > { %v535_v45 = vrot.slane %v530_v33, 4 }
 0x10c   : > { %v1686_v21 = vpop.permute.xlu1 %632  ;;  %v1688_v22 = vpop.permute.xlu0 %629 }
 0x10d   : > { %v635_v24 = vrot.slane %v1688_v22, 4  ;;  %v638_v29 = vsel %vm511_vm1, %v1688_v22, %v637_v26  ;;  %v647_v35 = vrot.slane %v1686_v21, 4 }
 0x10e   : > { %v646_v36 = vperm.slane %v638_v29, %v1690_v23 }
 0x10f   : > { %v636_v28 = vsel %vm511_vm1, %v635_v24, %v1681_v11 }
 0x110   : > { %v642_v34 = vperm.slane %v636_v28, %v1690_v23  ;;  %v673_v49 = vrot.slane %v646_v36, 4 }
 0x112   : > { %v661_v46 = vrot.slane %v642_v34, 4 }
 0x114   : > { %v1707_v38 = vpop.permute.xlu0 %626  ;;  %v505_v39 = vpop.permute.xlu1 %504 }
 0x115   : > { %v648_v42 = vsel %vm511_vm1, %v647_v35, %v1707_v38  ;;  %v649_v43 = vrot.slane %v1707_v38, 4  ;;  %v510_v44 = vrot.slane %v505_v39, 4  ;;  %v514_v48 = vsel %vm511_vm1, %v505_v39, %v513_v40 }
 0x116   : > { %v654_v47 = vperm.slane %v648_v42, %v1690_v23  ;;  %v522_v52 = vperm.slane %v514_v48, %v1690_v23 }
 0x117   : > { %v650_v50 = vsel %vm511_vm1, %v1686_v21, %v649_v43  ;;  %v512_v51 = vsel %vm511_vm1, %v510_v44, %v460_v12 }
 0x118   : > { %v658_v53 = vperm.slane %v650_v50, %v1690_v23  ;;  %v659_v54 = vrot.slane %v654_v47, 4  ;;  %v662_v55 = vsel %vm511_vm1, %v654_v47, %v661_v46  ;;  %v518_v56 = vperm.slane %v512_v51, %v1690_v23 }
 0x119   : > { %v670_v57 = vperm.slane %v662_v55, %v1705_v37  ;;  %v548_v58 = vsel %vm511_vm1, %v547_v41, %v522_v52  ;;  %v549_v59 = vrot.slane %v522_v52, 4 }
 0x11a   : > { %v660_v60 = vsel %vm511_vm1, %v659_v54, %v642_v34  ;;  %v671_v61 = vrot.slane %v658_v53, 4  ;;  %v674_v62 = vsel %vm511_vm1, %v658_v53, %v673_v49  ;;  %v536_v63 = vsel %vm511_vm1, %v535_v45, %v518_v56 }
 0x11b   : > { %v666_v0 = vperm.slane %v660_v60, %v1705_v37  ;;  %v685_v1 = vrot.slane %v670_v57, 4  ;;  %v682_v2 = vperm.slane %v674_v62, %v1705_v37  ;;  %v537_v3 = vrot.slane %v518_v56, 4 }
 0x11c   : > { %v672_v4 = vsel %vm511_vm1, %v671_v61, %v646_v36  ;;  %v542_v5 = vperm.slane %v536_v63, %v1705_v37  ;;  %v550_v7 = vsel %vm511_vm1, %v534_v32, %v549_v59  ;;  %v554_v8 = vperm.slane %v548_v58, %v1705_v37 }
 0x11d   : > { %v683_v9 = vrot.slane %v666_v0, 4  ;;  %v686_v10 = vsel %vm511_vm1, 0.0, %v685_v1  ;;  %v691_v12 = vsel %vm511_vm1, %v685_v1, %v666_v0  ;;  %v678_v13 = vperm.slane %v672_v4, %v1705_v37 }
 0x11e   : > { %v695_v14 = vperm.slane %v691_v12, %v1690_v23  ;;  %v696_v15 = vrot.slane %v686_v10, 4  ;;  %v689_v16 = vrot.slane %v682_v2, 4  ;;  %v538_v17 = vsel %vm511_vm1, %v530_v33, %v537_v3 }
 0x11f   : > { %v684_v18 = vsel %vm511_vm1, 0.0, %v683_v9  ;;  %v546_v19 = vperm.slane %v538_v17, %v1705_v37  ;;  %v558_v20 = vperm.slane %v550_v7, %v1705_v37  ;;  %v559_v24 = vrot.slane %v542_v5, 4 }
 0x120   : > { %v690_v25 = vsel %vm511_vm1, 0.0, %v689_v16  ;;  %v563_v26 = vrot.slane %v554_v8, 4  ;;  %v687_v27 = vrot.slane %v678_v13, 4  ;;  %v697_v28 = vsel %vm511_vm1, %v696_v15, %v684_v18 }
 0x121   : > { %v707_v29 = vrot.slane %v690_v25, 4  ;;  %v560_v30 = vsel %vm511_vm1, 0.0, %v559_v24  ;;  %v561_v31 = vrot.slane %v546_v19, 4  ;;  %v565_v32 = vrot.slane %v558_v20, 4 }
 0x122   : > { %v564_v33 = vsel %vm511_vm1, 0.0, %v563_v26  ;;  %v688_v34 = vsel %vm511_vm1, 0.0, %v687_v27  ;;  %v701_v35 = vperm.slane %v697_v28, %v1690_v23  ;;  %v702_v36 = vsel %vm511_vm1, %v689_v16, %v678_v13 }
 0x123   : > { %v562_v39 = vsel %vm511_vm1, 0.0, %v561_v31  ;;  %v566_v40 = vsel %vm511_vm1, 0.0, %v565_v32  ;;  %v567_v41 = vsel %vm511_vm1, %v561_v31, %v542_v5  ;;  %v578_v42 = vsel %vm511_vm1, %v565_v32, %v554_v8 }
 0x124   : > { %v571_v43 = vperm.slane %v567_v41, %v1690_v23  ;;  %v572_v44 = vrot.slane %v562_v39, 4  ;;  %v582_v45 = vperm.slane %v578_v42, %v1690_v23  ;;  %v583_v46 = vrot.slane %v566_v40, 4 }
 0x125   : > { %v706_v47 = vperm.slane %v702_v36, %v1690_v23  ;;  %v708_v48 = vsel %vm511_vm1, %v707_v29, %v688_v34  ;;  %v715_v49 = vrot.slane %v695_v14, 4  ;;  %v713_v50 = vrot.slane %v701_v35, 4 }
 0x126   : > { %v573_v51 = vsel %vm511_vm1, %v572_v44, %v560_v30  ;;  %v584_v52 = vsel %vm511_vm1, %v583_v46, %v564_v33  ;;  %v603_v53 = vrot.slane %v582_v45, 4  ;;  %v712_v54 = vperm.slane %v708_v48, %v1690_v23 }
 0x127   : > { %v588_v55 = vperm.slane %v584_v52, %v1690_v23  ;;  %v716_v56 = vsel %vm511_vm1, %v701_v35, %v715_v49  ;;  %v727_v57 = vrot.slane %v706_v47, 4  ;;  %v714_v58 = vsel %vm511_vm1, %v713_v50, %v695_v14 }
 0x128   : > { %v724_v59 = vperm.slane %v716_v56, %v1705_v37  ;;  %v720_v60 = vperm.slane %v714_v58, %v1705_v37  ;;  %v725_v61 = vrot.slane %v712_v54, 4  ;;  %v577_v62 = vperm.slane %v573_v51, %v1690_v23 }
 0x129   : > { %v728_v63 = vsel %vm511_vm1, %v712_v54, %v727_v57  ;;  %v591_v0 = vrot.slane %v571_v43, 4  ;;  %v604_v1 = vsel %vm511_vm1, %v588_v55, %v603_v53  ;;  %v601_v2 = vrot.slane %v588_v55, 4 }
 0x12a   : > { %v736_v3 = vperm.slane %v728_v63, %v1705_v37  ;;  %v743_v4 = vrot.slane %v724_v59, 4  ;;  %v726_v5 = vsel %vm511_vm1, %v725_v61, %v706_v47  ;;  %v739_v7 = vrot.slane %v720_v60, 4 }
 0x12b   : > { %v732_v8 = vperm.slane %v726_v5, %v1705_v37  ;;  %v592_v9 = vsel %vm511_vm1, %v577_v62, %v591_v0  ;;  %v612_v10 = vperm.slane %v604_v1, %v1705_v37  ;;  %v589_v12 = vrot.slane %v577_v62, 4 }
 0x12c   : > { %v744_v13 = vsel %vm511_vm1, %v736_v3, %v743_v4  ;;  %v741_v14 = vrot.slane %v736_v3, 4  ;;  %v600_v15 = vperm.slane %v592_v9, %v1705_v37  ;;  %v602_v16 = vsel %vm511_vm1, %v601_v2, %v582_v45 }
 0x12d   : > { %v748_v17 = vpack.c.bf16 %v744_v13, %v744_v13  ;;  %v740_v18 = vsel %vm511_vm1, %v732_v8, %v739_v7  ;;  %v737_v19 = vrot.slane %v732_v8, 4  ;;  %v590_v20 = vsel %vm511_vm1, %v589_v12, %v571_v43 }
 0x12e   : > { %v746_v24 = vpack.c.bf16 %v740_v18, %v740_v18  ;;  %v742_v25 = vsel %vm511_vm1, %v741_v14, %v724_v59  ;;  %v619_v26 = vrot.slane %v600_v15, 4  ;;  %v596_v27 = vperm.slane %v590_v20, %v1705_v37 }
 0x12f   : > { %v937_v28 = vsel %vm875_vm2, %v748_v17, 0  ;;  %v747_v29 = vpack.c.bf16 %v742_v25, %v742_v25  ;;  %v738_v30 = vsel %vm511_vm1, %v737_v19, %v720_v60  ;;  %v608_v31 = vperm.slane %v602_v16, %v1705_v37 }
 0x130   : > { %946 = vmatpush.bf16.xpose.msrb.mxu1 %v937_v28  ;;  %v899_v32 = vsel %vm875_vm2, %v746_v24, 0  ;;  %v745_v33 = vpack.c.bf16 %v738_v30, %v738_v30  ;;  %v615_v34 = vrot.slane %v596_v27, 4  ;;  %v617_v36 = vrot.slane %v612_v10, 4 }
 0x131   : > { %908 = vmatpush.bf16.xpose.msra.mxu3 %v899_v32  ;;  %v918_v35 = vsel %vm875_vm2, %v747_v29, 0  ;;  %v613_v39 = vrot.slane %v608_v31, 4  ;;  %v620_v41 = vsel %vm511_vm1, %v612_v10, %v619_v26  ;;  %v1410_v61 = vpack.i.bf16 %v1688_v22, %v1681_v11 }
 0x132   : > { %927 = vmatpush.bf16.xpose.msrb.mxu0 %v918_v35  ;;  %v880_v40 = vsel %vm875_vm2, %v745_v33, 0  ;;  %v616_v42 = vsel %vm511_vm1, %v608_v31, %v615_v34  ;;  %v618_v43 = vsel %vm511_vm1, %v617_v36, %v600_v15  ;;  %v624_v44 = vpack.c.bf16 %v620_v41, %v620_v41 }
 0x133   : > { %889 = vmatpush.bf16.xpose.msra.mxu2 %v880_v40  ;;  %v614_v45 = vsel %vm511_vm1, %v613_v39, %v596_v27  ;;  %v622_v46 = vpack.c.bf16 %v616_v42, %v616_v42  ;;  %v623_v47 = vpack.c.bf16 %v618_v43, %v618_v43  ;;  %v1415_v62 = vpack.i.bf16 %v1686_v21, %v1707_v38 }
 0x134   : > { %v621_v48 = vpack.c.bf16 %v614_v45, %v614_v45 }
 0x137   : > { %1347 = vmatmul.msk.bf16.vlgmr.msrb.gmra.mxu1 %vm875_vm2, %v624_v44 }
 0x138   : > { %1345 = vmatmul.msk.bf16.vlgmr.msra.gmra.mxu3 %vm875_vm2, %v622_v46 }
 0x139   : > { %1346 = vmatmul.msk.bf16.vlgmr.msrb.gmra.mxu0 %vm875_vm2, %v623_v47 }
 0x13a   : > { %1344 = vmatmul.msk.bf16.vlgmr.msra.gmra.mxu2 %vm875_vm2, %v621_v48 }
 0x1b4   : > { %v948_v49 = vpop.f32.mrf.mxu1 }
 0x1b5   : > { %v961_v58 = vsel %vm875_vm2, %v948_v49, -inf }
 0x1b6   : > { %v929_v50 = vpop.f32.mrf.mxu0 }
 0x1b7   : > { %v958_v51 = vsel %vm875_vm2, %v929_v50, -inf }
 0x1b8   : > { %959 = vmax.xlane.f32.xlu2 %v958_v51 }
 0x1bb   : > { %v910_v52 = vpop.f32.mrf.mxu3 }
 0x1bc   : > { %v950_v53 = vpop.f32.mrf.mxu1  ;;  %v955_v54 = vsel %vm875_vm2, %v910_v52, -inf }
 0x1bd   : > { %956 = vmax.xlane.f32.xlu1 %v955_v54  ;;  %v891_v55 = vpop.f32.mrf.mxu2 }
 0x1be   : > { %v931_v56 = vpop.f32.mrf.mxu0  ;;  %v952_v57 = vsel %vm875_vm2, %v891_v55, -inf }
 0x1bf   : > { %953 = vmax.xlane.f32.xlu0 %v952_v57 }
 0x1c0   : > { %962 = vmax.xlane.f32.xlu2 %v961_v58 }
 0x1c3   : > { %v912_v59 = vpop.f32.mrf.mxu3 }
 0x1c5   : > { %v893_v60 = vpop.f32.mrf.mxu2 }
 0x1d3   : > { %1411 = vrot.lane.b32.xlu0 %v1410_v61, %s1561_s30 }
 0x1d6   : > { %1416 = vrot.lane.b32.xlu1 %v1415_v62, %s1561_s30 }
 0x22b   : > { %v960_v63 = vpop.xlane.xlu2 %959 }
 0x22c   : > { %v966_v0 = vsub.f32 %v929_v50, %v960_v63 }
 0x22e   : > { %v972_v1 = vmul.f32 1.442695, %v966_v0 }
 0x230   : > { %1425 = vpow2.f32 %v972_v1  ;;  %v957_v2 = vpop.xlane.xlu1 %956 }
 0x231   : > { %v965_v5 = vsub.f32 %v910_v52, %v957_v2 }
 0x232   : > { %v954_v3 = vpop.xlane.xlu0 %953 }
 0x233   : > { %v964_v4 = vsub.f32 %v891_v55, %v954_v3  ;;  %v970_v22 = vmul.f32 1.442695, %v965_v5  ;;  %v963_v9 = vpop.xlane.xlu2 %962 }
 0x234   : > { %v967_v38 = vsub.f32 %v948_v49, %v963_v9 }
 0x235   : > { %v968_v7 = vmul.f32 1.442695, %v964_v4 }
 0x236   : > { %v1800_v8 = vpop.eup %1425  ;;  %v974_v12 = vmul.f32 1.442695, %v967_v38 }
 0x237   : > { %1427 = vpow2.f32 %v968_v7  ;;  %v982_v11 = vsel %vm875_vm2, %v1800_v8, 0.0 }
 0x238   : > { %983 = vadd.xlane.f32.xlu0 %v982_v11  ;;  %1429 = vpow2.f32 %v970_v22 }
 0x239   : > { %1431 = vpow2.f32 %v974_v12 }
 0x23d   : > { %v1804_v21 = vpop.eup %1427 }
 0x23e   : > { %v976_v10 = vsel %vm875_vm2, %v1804_v21, 0.0  ;;  %v1808_v13 = vpop.eup %1429 }
 0x23f   : > { %977 = vadd.xlane.f32.xlu2 %v976_v10  ;;  %v979_v17 = vsel %vm875_vm2, %v1808_v13, 0.0  ;;  %v1814_v28 = vpop.eup %1431 }
 0x240   : > { %v985_v41 = vsel %vm875_vm2, %v1814_v28, 0.0 }
 0x245   : > { %v1412_v14 = vpop.permute.xlu0 %1411 }
 0x246   : > { %v1414_v15 = vunpack.i.h.bf16 %v1412_v14  ;;  %v1413_v16 = vunpack.i.l.bf16 %v1412_v14 }
 0x247   : > { %980 = vadd.xlane.f32.xlu2 %v979_v17 }
 0x248   : > { %v761_v18 = vrot.slane %v1414_v15, 4  ;;  %v763_v19 = vrot.slane %v1413_v16, 4  ;;  %v1417_v20 = vpop.permute.xlu1 %1416 }
 0x249   : > { %v1419_v24 = vunpack.i.h.bf16 %v1417_v20  ;;  %v1418_v25 = vunpack.i.l.bf16 %v1417_v20 }
 0x24a   : > { %v762_v26 = vsel %vm511_vm1, %v761_v18, %v1413_v16  ;;  %v764_v27 = vsel %vm511_vm1, %v1414_v15, %v763_v19 }
 0x24b   : > { %v768_v29 = vperm.slane %v762_v26, %v1690_v23  ;;  %v772_v30 = vperm.slane %v764_v27, %v1690_v23  ;;  %v773_v31 = vrot.slane %v1419_v24, 4  ;;  %v775_v32 = vrot.slane %v1418_v25, 4 }
 0x24d   : > { %v787_v33 = vrot.slane %v768_v29, 4  ;;  %v799_v34 = vrot.slane %v772_v30, 4  ;;  %v774_v35 = vsel %vm511_vm1, %v773_v31, %v1418_v25  ;;  %v776_v36 = vsel %vm511_vm1, %v1419_v24, %v775_v32 }
 0x24e   : > { %v780_v39 = vperm.slane %v774_v35, %v1690_v23  ;;  %v784_v40 = vperm.slane %v776_v36, %v1690_v23 }
 0x24f   : > { %986 = vadd.xlane.f32.xlu2 %v985_v41 }
 0x250   : > { %v785_v42 = vrot.slane %v780_v39, 4  ;;  %v788_v43 = vsel %vm511_vm1, %v780_v39, %v787_v33  ;;  %v797_v44 = vrot.slane %v784_v40, 4  ;;  %v800_v45 = vsel %vm511_vm1, %v784_v40, %v799_v34 }
 0x251   : > { %v796_v46 = vperm.slane %v788_v43, %v1705_v37  ;;  %v808_v47 = vperm.slane %v800_v45, %v1705_v37 }
 0x252   : > { %v786_v48 = vsel %vm511_vm1, %v785_v42, %v768_v29  ;;  %v798_v49 = vsel %vm511_vm1, %v797_v44, %v772_v30 }
 0x253   : > { %v792_v50 = vperm.slane %v786_v48, %v1705_v37  ;;  %v804_v51 = vperm.slane %v798_v49, %v1705_v37  ;;  %v811_v52 = vrot.slane %v796_v46, 4  ;;  %v815_v53 = vrot.slane %v808_v47, 4 }
 0x255   : > { %v809_v54 = vrot.slane %v792_v50, 4  ;;  %v812_v55 = vsel %vm511_vm1, 0.0, %v811_v52  ;;  %v813_v56 = vrot.slane %v804_v51, 4  ;;  %v816_v57 = vsel %vm511_vm1, 0.0, %v815_v53 }
 0x256   : > { %v817_v58 = vsel %vm511_vm1, %v811_v52, %v792_v50  ;;  %v822_v59 = vrot.slane %v812_v55, 4  ;;  %v828_v60 = vsel %vm511_vm1, %v815_v53, %v804_v51  ;;  %v833_v61 = vrot.slane %v816_v57, 4  ;;  %v1081_v55 = vld [vmem:[#allocation6] sm:$0xf] }
 0x257   : > { %v810_v62 = vsel %vm511_vm1, 0.0, %v809_v54  ;;  %v814_v63 = vsel %vm511_vm1, 0.0, %v813_v56  ;;  %v832_v0 = vperm.slane %v828_v60, %v1690_v23  ;;  %v821_v1 = vperm.slane %v817_v58, %v1690_v23  ;;  %v1082_v56 = vld [vmem:[#allocation6 + $0x4] sm:$0xf]  ;;  %v1084_v58 = vld [vmem:[#allocation6 + $0xc] sm:$0xf] }
 0x258   : > { %v823_v2 = vsel %vm511_vm1, %v822_v59, %v810_v62  ;;  %v834_v3 = vsel %vm511_vm1, %v833_v61, %v814_v63  ;;  %v1089_v57 = vsel %vm1003_vm3, %v1081_v55, 0  ;;  %v1146_v59 = vsel %vm1003_vm3, %v1084_v58, 0 }
 0x259   : > { %v827_v4 = vperm.slane %v823_v2, %v1690_v23  ;;  %v838_v5 = vperm.slane %v834_v3, %v1690_v23  ;;  %v841_v7 = vrot.slane %v821_v1, 4  ;;  %v853_v11 = vrot.slane %v832_v0, 4 }
 0x25b   : > { %v842_v22 = vsel %vm511_vm1, %v827_v4, %v841_v7  ;;  %v854_v9 = vsel %vm511_vm1, %v838_v5, %v853_v11  ;;  %v839_v38 = vrot.slane %v827_v4, 4  ;;  %v851_v10 = vrot.slane %v838_v5, 4 }
 0x25c   : > { %v850_v12 = vperm.slane %v842_v22, %v1705_v37  ;;  %v862_v14 = vperm.slane %v854_v9, %v1705_v37 }
 0x25d   : > { %v840_v15 = vsel %vm511_vm1, %v839_v38, %v821_v1  ;;  %v852_v16 = vsel %vm511_vm1, %v851_v10, %v832_v0 }
 0x25e   : > { %v867_v17 = vrot.slane %v862_v14, 4  ;;  %v869_v18 = vrot.slane %v850_v12, 4  ;;  %v846_v23 = vperm.slane %v840_v15, %v1705_v37  ;;  %v858_v19 = vperm.slane %v852_v16, %v1705_v37 }
 0x260   : > { %v868_v20 = vsel %vm511_vm1, %v867_v17, %v850_v12  ;;  %v870_v24 = vsel %vm511_vm1, %v862_v14, %v869_v18  ;;  %v863_v25 = vrot.slane %v858_v19, 4  ;;  %v865_v26 = vrot.slane %v846_v23, 4 }
 0x261   : > { %v873_v27 = vpack.c.bf16 %v868_v20, %v868_v20  ;;  %v874_v29 = vpack.c.bf16 %v870_v24, %v870_v24  ;;  %v424_v24 = vunpack.c.l.bf16 %v1670_v6 }
 0x262   : > { %v864_v30 = vsel %vm511_vm1, %v863_v25, %v846_v23  ;;  %v866_v31 = vsel %vm511_vm1, %v858_v19, %v865_v26  ;;  %v1422_v19 = vld [vmem:[%s1907_s7] ss:$0 sm:$0xff] }
 0x263   : > { %v1043_v32 = vsel %vm1003_vm3, %v873_v27, 0  ;;  %v1062_v33 = vsel %vm1003_vm3, %v874_v29, 0  ;;  %v871_v34 = vpack.c.bf16 %v864_v30, %v864_v30  ;;  %v872_v35 = vpack.c.bf16 %v866_v31, %v866_v31 }
 0x264   : > { %1052 = vmatpush.bf16.msra.mxu0 %v1043_v32  ;;  %1071 = vmatpush.bf16.msra.mxu1 %v1062_v33  ;;  %v1562_v31 = vmov 32.0  }
 0x265   : > { %v1005_v37 = vsel %vm1003_vm3, %v871_v34, 0  ;;  %v1024_v36 = vsel %vm1003_vm3, %v872_v35, 0 }
 0x266   : > { %1014 = vmatpush.bf16.msrb.mxu2 %v1005_v37  ;;  %1033 = vmatpush.bf16.msrb.mxu3 %v1024_v36 }
 0x268   : > { %1155 = vmatpush.bf16.msrb.mxu1 %v1146_v59 }
 0x26a   : > { %1098 = vmatpush.bf16.msra.mxu2 %v1089_v57 }
 0x2ab   : > { %v984_v39 = vpop.xlane.xlu0 %983 }
 0x2ac   : > { %1433 = vrcp.f32 %v984_v39 }
 0x2b2   : > { %v1434_v40 = vpop.eup %1433  ;;  %v978_v41 = vpop.xlane.xlu2 %977 }
 0x2b3   : > { %v994_v42 = vmul.f32 %v1434_v40, %v1800_v8  ;;  %1435 = vrcp.f32 %v978_v41 }
 0x2b5   : > { %v998_v43 = vpack.c.bf16 %v994_v42, %v994_v42 }
 0x2b7   : > { %1350 = vmatmul.msk.bf16.vlgmr.msra.gmra.mxu0 %vm875_vm2, %v998_v43 }
 0x2b9   : > { %v1436_v44 = vpop.eup %1435 }
 0x2ba   : > { %v992_v45 = vmul.f32 %v1436_v44, %v1804_v21  ;;  %v981_v46 = vpop.xlane.xlu2 %980  ;;  %v1083_v21 = vld [vmem:[#allocation6 + $0x8] sm:$0xf] }
 0x2bb   : > { %1437 = vrcp.f32 %v981_v46  ;;  %v1127_v54 = vsel %vm1003_vm3, %v1083_v21, 0 }
 0x2bc   : > { %v996_v47 = vpack.c.bf16 %v992_v45, %v992_v45  ;;  %1136 = vmatpush.bf16.msrb.mxu0 %v1127_v54 }
 0x2be   : > { %1348 = vmatmul.msk.bf16.vlgmr.msrb.gmra.mxu2 %vm875_vm2, %v996_v47 }
 0x2c1   : > { %v1438_v48 = vpop.eup %1437 }
 0x2c2   : > { %v993_v49 = vmul.f32 %v1438_v48, %v1808_v13  ;;  %v987_v50 = vpop.xlane.xlu2 %986  ;;  %v1108_v13 = vsel %vm1003_vm3, %v1082_v56, 0 }
 0x2c3   : > { %1439 = vrcp.f32 %v987_v50  ;;  %1117 = vmatpush.bf16.msra.mxu3 %v1108_v13 }
 0x2c4   : > { %v997_v51 = vpack.c.bf16 %v993_v49, %v993_v49  ;;  %1441 = vrcp.f32 %v1562_v31 }
 0x2c6   : > { %1349 = vmatmul.msk.bf16.vlgmr.msrb.gmra.mxu3 %vm875_vm2, %v997_v51 }
 0x2c9   : > { %v1440_v8 = vpop.eup %1439 }
 0x2ca   : > { %v995_v52 = vmul.f32 %v1440_v8, %v1814_v28  ;;  %v1442_v32 = vpop.eup %1441  ;;  %v1423_v8 = vld [vmem:[%s1908_s8] ss:$0 sm:$0xff] }
 0x2cb   : > { %v1180_v33 = vmul.f32 32.0, %v1442_v32  ;;  %vm1184_vm4 = vweird.f32 %v1442_v32 }
 0x2cc   : > { %v999_v53 = vpack.c.bf16 %v995_v52, %v995_v52 }
 0x2cd   : > { %v1181_v34 = vsub.f32 1.0, %v1180_v33 }
 0x2ce   : > { %1351 = vmatmul.msk.bf16.vlgmr.msra.gmra.mxu1 %vm875_vm2, %v999_v53  ;;  %v1424_v53 = vld [vmem:[%s1909_s9] ss:$0 sm:$0xff] }
 0x2cf   : > { %v1182_v35 = vmul.f32 %v1442_v32, %v1181_v34 }
 0x2d1   : > { %v1183_v37 = vadd.f32 %v1442_v32, %v1182_v35 }
 0x2d3   : > { %v1185_v36 = vsel %vm1184_vm4, %v1442_v32, %v1183_v37 }
 0x334   : > { %v1054_v28 = vpop.f32.mrf.mxu0 }
 0x335   : > { %v1079_v60 = vpack.c.bf16 %v1054_v28, %v1054_v28 }
 0x337   : > { %1354 = vmatmul.msk.bf16.vlgmr.msrb.gmra.mxu0 %vm875_vm2, %v1079_v60 }
 0x33c   : > { %v1056_v61 = vpop.f32.mrf.mxu0 }
 0x341   : > { %v1016_v62 = vpop.f32.mrf.mxu2 }
 0x342   : > { %v1077_v63 = vpack.c.bf16 %v1016_v62, %v1016_v62 }
 0x344   : > { %1352 = vmatmul.msk.bf16.vlgmr.msra.gmra.mxu2 %vm875_vm2, %v1077_v63 }
 0x349   : > { %v1018_v0 = vpop.f32.mrf.mxu2  ;;  %v1035_v1 = vpop.f32.mrf.mxu3 }
 0x34a   : > { %v1078_v2 = vpack.c.bf16 %v1035_v1, %v1035_v1 }
 0x34b   : > { %v1073_v3 = vpop.f32.mrf.mxu1 }
 0x34c   : > { %v1080_v4 = vpack.c.bf16 %v1073_v3, %v1073_v3  ;;  %1353 = vmatmul.msk.bf16.vlgmr.msra.gmra.mxu3 %vm875_vm2, %v1078_v2 }
 0x34e   : > { %1355 = vmatmul.msk.bf16.vlgmr.msrb.gmra.mxu1 %vm875_vm2, %v1080_v4 }
 0x351   : > { %v1037_v5 = vpop.f32.mrf.mxu3 }
 0x353   : > { %v1075_v7 = vpop.f32.mrf.mxu1 }
 0x3b4   : > { %v1138_v11 = vpop.f32.mrf.mxu0 }
 0x3b5   : > { %v1164_v17 = vsel %vm446_vm0, %v1138_v11, 0.0 }
 0x3bc   : > { %v1140_v22 = vpop.f32.mrf.mxu0 }
 0x3c7   : > { %v1100_v9 = vpop.f32.mrf.mxu2 }
 0x3c8   : > { %v1161_v14 = vsel %vm446_vm0, %v1100_v9, 0.0 }
 0x3cb   : > { %v1157_v38 = vpop.f32.mrf.mxu1 }
 0x3cc   : > { %v1166_v20 = vsel %vm446_vm0, %v1157_v38, 0.0 }
 0x3cf   : > { %v1102_v10 = vpop.f32.mrf.mxu2  ;;  %v1119_v12 = vpop.f32.mrf.mxu3 }
 0x3d0   : > { %v1162_v15 = vsel %vm446_vm0, %v1119_v12, 0.0 }
 0x3d1   : > { %v1163_v16 = vadd.f32 %v1162_v15, %v1161_v14 }
 0x3d3   : > { %v1165_v18 = vadd.f32 %v1164_v17, %v1163_v16  ;;  %v1159_v23 = vpop.f32.mrf.mxu1 }
 0x3d5   : > { %v1167_v25 = vadd.f32 %v1166_v20, %v1165_v18 }
 0x3d7   : > { %v1121_v26 = vpop.f32.mrf.mxu3  ;;  %v1172_v27 = vadd.f32 %v1422_v19, %v1167_v25 }
 0x3d9   : > { %v1173_v29 = vadd.f32 %v1172_v27, %v424_v24 }
 0x3db   : > { %v1176_v30 = vsel %vm446_vm0, %v1173_v29, 0.0 }
 0x3dc   : > { %1177 = vadd.xlane.f32.xlu1 %v1176_v30 }
 0x44f   : > { %v1178_v39 = vpop.xlane.xlu1 %1177 }
 0x450   : > { %v1186_v40 = vmul.f32 %v1185_v36, %v1178_v39 }
 0x452   : > { %v1187_v41 = vsub.f32 %v1173_v29, %v1186_v40 }
 0x454   : > { %v1188_v6 = vmul.f32 %v1187_v41, %v1187_v41 }
 0x456   : > { %v1189_v42 = vsel %vm446_vm0, %v1188_v6, 0.0 }
 0x457   : > { %1190 = vadd.xlane.f32.xlu2 %v1189_v42 }
 0x4ca   : > { %v1191_v43 = vpop.xlane.xlu2 %1190 }
 0x4cb   : > { %v1192_v44 = vmul.f32 %v1191_v43, %v1185_v36 }
 0x4cd   : > { %v1193_v45 = vadd.f32 1e-05, %v1192_v44 }
 0x4cf   : > { %1443 = vrsqrt.f32 %v1193_v45  ;;  %vm1200_vm6 = vweird.f32 %v1193_v45 }
 0x4d5   : > { %v1444_v46 = vpop.eup %1443 }
 0x4d6   : > { %v1195_v47 = vmul.f32 %v1444_v46, %v1193_v45  ;;  %vm1201_vm5 = vweird.f32 %v1444_v46 }
 0x4d7   : > { %vm1202_vm7 = vmor %vm1200_vm6, %vm1201_vm5 }
 0x4d8   : > { %v1196_v48 = vmul.f32 %v1444_v46, %v1195_v47 }
 0x4da   : > { %v1197_v49 = vmul.f32 0.5, %v1196_v48 }
 0x4dc   : > { %v1198_v50 = vsub.f32 1.5, %v1197_v49 }
 0x4de   : > { %v1199_v51 = vmul.f32 %v1444_v46, %v1198_v50 }
 0x4e0   : > { %v1203_v52 = vsel %vm1202_vm7, %v1444_v46, %v1199_v51 }
 0x4e1   : > { %v1204_v21 = vmul.f32 %v1203_v52, %v1187_v41 }
 0x4e3   : > { %v1208_v54 = vmul.f32 %v1423_v8, %v1204_v21 }
 0x4e5   : > { %v1212_v55 = vadd.f32 %v1424_v53, %v1208_v54 }
 0x4e7   : > { %v1213_v56 = vpack.c.bf16 %v1212_v55, %v1212_v55 }
 0x4e9   : > { %1215 = vst.msk [vmem:[%s421_s22] sm:$0xf] %vm1214_vm8, %v1213_v56 }
 0x4ea PF: > { %s22_s13 = sadd.s32 1, %s1549_s13  }
 0x4eb   : > { %p19_p7 = scmp.ge.s32.totalorder %s22_s13, 4  }
 0x4ed   :  { %21 = sbr.rel (!%p19_p7) target bundleno = 2 (0x2), region = 106 }
 0x4f2   :  { %1235 = vsyncpa [#allocation3], 1 }
 0x4f3   :  { %1237 = vsyncpa [#allocation3 + $0x1], 1 }
 0x4f4   :  { %1238 = vsyncpa [#allocation5], 1 }

// kernel: decoder_layer.3
= control target key start
LH: loop header
LB: loop body
LE: loop exit
PB: predicated region body
PF: predicated region fallthrough
CT: control target
= control target key end

     0   :  { %14 = vsyncpa [#allocation3], 0  ;;  %s2034_s0 = inlined_call_operand.hbm [shape: f32[2,8,32], index: 0, kind: input, shape index: {}]   ;;  %s2035_s1 = inlined_call_operand.vmem [shape: bf16[32,32], index: 1, kind: input, shape index: {}]   ;;  %s2036_s2 = inlined_call_operand.vmem [shape: f32[1,32], index: 2, kind: input, shape index: {}]   ;;  %s2037_s3 = inlined_call_operand.hbm [shape: bf16[32,64], index: 3, kind: input, shape index: {}]   ;;  %s2038_s4 = inlined_call_operand.vmem [shape: f32[1,64], index: 4, kind: input, shape index: {}]   ;;  %s2039_s5 = inlined_call_operand.hbm [shape: bf16[4,8,32], index: 5, kind: input, shape index: {}]   ;;  %s2040_s6 = inlined_call_operand.vmem [shape: f32[1,32], index: 6, kind: input, shape index: {}]   ;;  %s2041_s7 = inlined_call_operand.vmem [shape: f32[1,32], index: 7, kind: input, shape index: {}]   ;;  %s2042_s8 = inlined_call_operand.hbm [shape: f32[1,32], index: 8, kind: input, shape index: {}]   ;;  %s2043_s9 = inlined_call_operand.vmem [shape: bf16[2,8,32], index: 9, kind: output, shape index: {}]  }
   0x1   :  { %16 = vsyncpa [#allocation3 + $0x1], 0 }
   0x2   :  { %17 = vsyncpa [#allocation5], 0 }
   0x3   :  { %18 = vsyncpa [#allocation8], 0  ;;  %s1682_s30 = smov 0   ;;  %s1684_s10 = smov 0  }
   0x4   :  { %s1686_s11 = smov 0   ;;  %s1688_s12 = smov 0  }
   0x5 LB: > { %s266_s15 = sshll.u32 %s2037_s3, 4  ;;  %s1706_s16 = sadd.s32 4294967295, %s1618_s12   ;;  %s1618_s12 = sphi %s1688_s12, %s2051_s12   ;;  %s1614_s11 = sphi %s1686_s11, %s2050_s11   ;;  %s1610_s10 = sphi %s1684_s10, %s2049_s10   ;;  %s1606_s30 = sphi %s1682_s30, %s2048_s30   ;;  %s267_s15 = int_to_ptr.hbm [resolvable:$true] %s266_s15 }
   0x6   : > { %p1293_p0 = scmp.ge.s32.totalorder %s1618_s12, 1  ;;  %p45_p1 = scmp.eq.s32.totalorder %s1706_s16, 0 }
   0x7   : > { %p249_p2 = scmp.lt.s32.totalorder %s1618_s12, 3  ;;  %s1620_s18 = smov [#allocation4]  }
   0x8   : > { %s268_s19 = sshll.u32 %s1620_s18, 4  ;;  %s283_s22 = sshll.u32 %s2039_s5, 4  ;;  %s269_s19 = int_to_ptr.vmem [resolvable:$true] %s268_s19  ;;  %s284_s22 = int_to_ptr.hbm [resolvable:$true] %s283_s22 }
   0x9   : > { %p1711_p3 = pnand %p1293_p0, %p249_p2  ;;  %s304_s26 = sshll.u32 %s2042_s8, 4  ;;  %s305_s26 = int_to_ptr.hbm [resolvable:$true] %s304_s26 }
   0xa   : > { %s1621_s27 = smov [#allocation6]   ;;  %s1622_s29 = smov 64  }
   0xb   : > { %p1356_p4 = pneg %p1711_p3  ;;  %s285_s28 = sshll.u32 %s1621_s27, 4  ;;  %s286_s28 = int_to_ptr.vmem [resolvable:$true] %s285_s28 }
   0xc   : > { %s1623_s13 = smov 4   ;;  %s1624_s14 = smov [#allocation7]  }
   0xd   : > { %p1722_p5 = pnand %p1356_p4, %p45_p1  ;;  %s306_s18 = sshll.u32 %s1624_s14, 4  ;;  %s307_s18 = int_to_ptr.vmem [resolvable:$true] %s306_s18 }
   0xe   : > { %s1736_s20 = sadd.s32 1, %s1618_s12   ;;  %s31_s24 = sadd.s32 1, %s1614_s11 }
   0xf   : > { %1359 = dma.hbm_to_vmem [thread:$0]  (!%p1722_p5), %s267_s15, 256, %s269_s19, [#allocation5], %s1622_s29, %s1622_s29, %s1623_s13  }
  0x10   : > { %1362 = dma.hbm_to_vmem [thread:$0]  (!%p1722_p5), %s284_s22, 256, %s286_s28, [#allocation5], %s1622_s29, %s1622_s29, %s1623_s13  }
  0x11   : > { %1365 = dma.hbm_to_vmem [thread:$0]  (!%p1722_p5), %s305_s26, 16, %s307_s18, [#allocation8]  }
  0x12   : > { %s28_s21 = ssub.s32 %s1618_s12, %s1736_s20  ;;  %p38_p7 = scmp.ne.s32.totalorder %s1614_s11, %s1610_s10 }
  0x13   : > { %p29_p6 = scmp.eq.s32.totalorder %s28_s21, 0  ;;  %p39_p8 = scmp.eq.s32.totalorder %s1618_s12, 0 }
  0x14   : > { %p44_p9 = scmp.ne.s32.totalorder %s1610_s10, %s1606_s30  ;;  %p1373_p12 = scmp.lt.s32.totalorder %s1618_s12, 2 }
  0x15   : > { %s1747_s15 = scalar_select %p29_p6, %s1614_s11, %s31_s24  }
  0x16   : > { %p40_p10 = por %p39_p8, %p38_p7  ;;  %p1751_p11 = por %p45_p1, %p44_p9 }
  0x17   : > { %s317_s22 = sand.u32 1, %s1614_s11   ;;  %s1299_s25 = sshll.u32 %s1618_s12, 3 }
  0x18   : > { %s1298_s23 = sshll.u32 %s317_s22, 3  ;;  %s325_s28 = scalar_lea.hbm %s2034_s0, %s1299_s25 }
  0x19   : > { %s321_s29 = scalar_lea.vmem [#allocation2], %s1298_s23  ;;  %s327_s14 = sshll.u32 %s325_s28, 4  ;;  %s328_s14 = int_to_ptr.hbm [resolvable:$true] %s327_s14 }
  0x1a   : > { %s329_s13 = sshll.u32 %s321_s29, 4  ;;  %p1761_p13 = pnand %p1373_p12, %p40_p10  ;;  %s330_s13 = int_to_ptr.vmem [resolvable:$true] %s329_s13 }
  0x1b   : > { %s318_s18 = scalar_lea.sflag [#allocation3], %s317_s22  ;;  %s1546_s21 = sshra.s32 %s328_s14, 4  ;;  %s1547_s21 = int_to_ptr.hbm [resolvable:$true] %s1546_s21 }
  0x1c   : > { %s1548_s24 = scalar_lea.hbm %s1547_s21, 8  ;;  %p1550_p2 = pneg %p1761_p13 }
  0x1d   : > { %p1549_p0 = scmp.ne.s32.totalorder %s1547_s21, %s1548_s24  ;;  %s1553_s25 = scalar_lea.hbm %s2034_s0, 16 }
  0x1e   : > { %p1554_p6 = scmp.lt.s32.totalorder %s1547_s21, %s2034_s0  ;;  %p1555_p7 = scmp.lt.s32.totalorder %s1553_s25, %s1548_s24 }
  0x1f   : > { %p1551_p4 = pnand %p1550_p2, %p1549_p0 }
  0x20   : > { %p1556_p8 = por %p1555_p7, %p1554_p6 }
  0x21   : > { %p1552_p5 = pneg %p1551_p4 }
  0x23   : > { %p1557_p9 = pnand %p1556_p8, %p1552_p5 }
  0x25   : > { %1560 = shalt.err (!%p1557_p9)
}
  0x26   : > { %1369 = dma.hbm_to_vmem [thread:$0]  (!%p1761_p13), %s328_s14, 128, %s330_s13, %s318_s18  }
  0x27   : > { %338 = sbr.rel (%p1711_p3) target bundleno = 1290 (0x50a), region = 56  ;;  %s340_s22 = sand.u32 (!%p1711_p3), 1, %s1610_s10  }
  0x28   : > { %s1301_s28 = sshll.u32 (!%p1711_p3), %s340_s22, 3  ;;  %s341_s29 = scalar_lea.sflag (!%p1711_p3), [#allocation3], %s340_s22 }
  0x29   : > { %s344_s12 = scalar_lea.vmem (!%p1711_p3), [#allocation2], %s1301_s28 }
  0x2c   : > { %1593 = dma.done.wait (%p1751_p11), %s341_s29, 128  }
  0x2d   : > { %1595 = vsyncadd (%p1751_p11), %s341_s29, 4294967168 }
  0x2e   : > { %1597 = dma.done.wait (%p45_p1), [#allocation5], 512  }
  0x2f   : > { %1599 = vsyncadd (%p45_p1), [#allocation5], 4294966784 }
  0x30   : > { %1601 = dma.done.wait (%p45_p1), [#allocation8], 16  }
  0x31   : > { %1603 = vsyncadd (%p45_p1), [#allocation8], 4294967280  ;;  %v1341_v0 = vld [vmem:[#allocation4 + $0x8] sm:$0xff]  ;;  %v1339_v1 = vld [vmem:[%s2035_s1 + $0x8] sm:$0xff]  ;;  %vm421_vm0 = vcmask 261120   ;;  %s1625_s23 = smov 104  }
  0x32   : > { %v1340_v2 = vld [vmem:[#allocation4] sm:$0xff]  ;;  %v1793_v3 = vld [vmem:[%s344_s12] sm:$0xff]  ;;  %464 = vmatpush.bf16.msra.mxu1 %v1341_v0  ;;  %431 = vmatpush.bf16.msra.mxu0 %v1339_v1  ;;  %s1626_s25 = smov 112   ;;  %s1627_s26 = smov 120   ;;  %v1628_v16 = vmov 1983009808  }
  0x33   : > { %v1338_v4 = vld [vmem:[%s2035_s1] sm:$0xff]  ;;  %v400_v5 = vpack.c.bf16 %v1793_v3, %v1793_v3  ;;  %v487_v17 = vunpack.c.l.s4 %v1628_v16  ;;  %vm482_vm1 = vcmask 1047556   ;;  %v1629_v29 = vmov 1934713408   ;;  %s1630_s27 = smov 96   ;;  %p394_p1 = scmp.lt.s32.totalorder %s1706_s16, 1 }
  0x34   : > { %v1431_v6 = vld [vmem:[%s2038_s4] ss:$0 sm:$0xff]  ;;  %v511_v30 = vunpack.c.l.s4 %v1629_v29  ;;  %vm846_vm2 = vcmask 64512   ;;  %vm985_vm4 = vcmask 1043456   ;;  %vm1196_vm9 = vcmask 257024  }
  0x35   : > { %v1432_v7 = vld [vmem:[%s2036_s2] ss:$0 sm:$0xff]  ;;  %v1817_v22 = vunpack.c.0.s8 %v487_v17  ;;  %s2053_s16 = smov (!%p394_p1, %s1706_s16), 1 }
  0x36   : > { %465 = vmatpush.bf16.msra.mxu1 %v1340_v2  ;;  %432 = vmatpush.bf16.msra.mxu0 %v1338_v4  ;;  %v1832_v36 = vunpack.c.0.s8 %v511_v30  ;;  %s1305_s17 = sshll.u32 %s2053_s16, 2 }
  0x37   : > { %s397_s14 = scalar_lea.vmem %s2043_s9, %s1305_s17 }
  0x39   : > { %1323 = vmatmul.msk.bf16.vlgmr.msra.gmra.mxu1 %vm421_vm0, %v400_v5  ;;  %1314 = vmatmul.msk.bf16.vlgmr.msra.gmra.mxu0 %vm421_vm0, %v400_v5 }
  0xb6   : > { %v467_v8 = vpop.f32.mrf.mxu1  ;;  %v434_v9 = vpop.f32.mrf.mxu0 }
  0xb7   : > { %v1808_v10 = vadd.f32 %v1431_v6, %v467_v8  ;;  %v435_v11 = vadd.f32 %v1432_v7, %v434_v9 }
  0xb9   : > { %603 = vrot.lane.b32.xlu1 %v1808_v10, %s1625_s23  ;;  %600 = vrot.lane.b32.xlu0 %v1808_v10, %s1626_s25  ;;  %v608_v25 = vrot.slane %v1808_v10, 4  ;;  %v484_v39 = vrot.slane %v435_v11, 4 }
  0xba   : > { %472 = vrot.lane.b32.xlu2 %v435_v11, %s1627_s26 }
  0xbe   : > { %v469_v12 = vpop.f32.mrf.mxu1  ;;  %v436_v13 = vpop.f32.mrf.mxu0 }
  0xc1   : > { %597 = vrot.lane.b32.xlu0 %v1808_v10, %s1627_s26  ;;  %475 = vrot.lane.b32.xlu1 %v435_v11, %s1626_s25 }
  0xc2   : > { %478 = vrot.lane.b32.xlu2 %v435_v11, %s1625_s23 }
 0x114   : > { %v473_v14 = vpop.permute.xlu2 %472 }
 0x115   : > { %v496_v18 = vrot.slane %v473_v14, 4 }
 0x11c   : > { %v479_v15 = vpop.permute.xlu2 %478 }
 0x11d   : > { %v494_v19 = vrot.slane %v479_v15, 4  ;;  %v497_v24 = vsel %vm482_vm1, %v479_v15, %v496_v18 }
 0x11e   : > { %v505_v31 = vperm.slane %v497_v24, %v1817_v22 }
 0x11f   : > { %v495_v26 = vsel %vm482_vm1, %v494_v19, %v473_v14 }
 0x120   : > { %v501_v32 = vperm.slane %v495_v26, %v1817_v22  ;;  %v518_v40 = vrot.slane %v505_v31, 4 }
 0x122   : > { %v506_v44 = vrot.slane %v501_v32, 4 }
 0x12b   : > { %v1813_v20 = vpop.permute.xlu1 %603  ;;  %v1815_v21 = vpop.permute.xlu0 %600 }
 0x12c   : > { %v606_v23 = vrot.slane %v1815_v21, 4  ;;  %v609_v28 = vsel %vm482_vm1, %v1815_v21, %v608_v25  ;;  %v618_v34 = vrot.slane %v1813_v20, 4 }
 0x12d   : > { %v617_v35 = vperm.slane %v609_v28, %v1817_v22 }
 0x12e   : > { %v607_v27 = vsel %vm482_vm1, %v606_v23, %v1808_v10 }
 0x12f   : > { %v613_v33 = vperm.slane %v607_v27, %v1817_v22  ;;  %v644_v48 = vrot.slane %v617_v35, 4 }
 0x131   : > { %v632_v45 = vrot.slane %v613_v33, 4 }
 0x133   : > { %v1834_v37 = vpop.permute.xlu0 %597  ;;  %v476_v38 = vpop.permute.xlu1 %475 }
 0x134   : > { %v619_v41 = vsel %vm482_vm1, %v618_v34, %v1834_v37  ;;  %v620_v42 = vrot.slane %v1834_v37, 4  ;;  %v481_v43 = vrot.slane %v476_v38, 4  ;;  %v485_v47 = vsel %vm482_vm1, %v476_v38, %v484_v39 }
 0x135   : > { %v625_v46 = vperm.slane %v619_v41, %v1817_v22  ;;  %v493_v51 = vperm.slane %v485_v47, %v1817_v22 }
 0x136   : > { %v621_v49 = vsel %vm482_vm1, %v1813_v20, %v620_v42  ;;  %v483_v50 = vsel %vm482_vm1, %v481_v43, %v435_v11 }
 0x137   : > { %v629_v52 = vperm.slane %v621_v49, %v1817_v22  ;;  %v630_v53 = vrot.slane %v625_v46, 4  ;;  %v633_v54 = vsel %vm482_vm1, %v625_v46, %v632_v45  ;;  %v489_v55 = vperm.slane %v483_v50, %v1817_v22 }
 0x138   : > { %v641_v56 = vperm.slane %v633_v54, %v1832_v36  ;;  %v519_v57 = vsel %vm482_vm1, %v518_v40, %v493_v51  ;;  %v520_v58 = vrot.slane %v493_v51, 4 }
 0x139   : > { %v631_v59 = vsel %vm482_vm1, %v630_v53, %v613_v33  ;;  %v642_v60 = vrot.slane %v629_v52, 4  ;;  %v645_v61 = vsel %vm482_vm1, %v629_v52, %v644_v48  ;;  %v507_v62 = vsel %vm482_vm1, %v506_v44, %v489_v55 }
 0x13a   : > { %v637_v63 = vperm.slane %v631_v59, %v1832_v36  ;;  %v656_v0 = vrot.slane %v641_v56, 4  ;;  %v653_v1 = vperm.slane %v645_v61, %v1832_v36  ;;  %v508_v2 = vrot.slane %v489_v55, 4 }
 0x13b   : > { %v643_v4 = vsel %vm482_vm1, %v642_v60, %v617_v35  ;;  %v513_v5 = vperm.slane %v507_v62, %v1832_v36  ;;  %v521_v6 = vsel %vm482_vm1, %v505_v31, %v520_v58  ;;  %v525_v7 = vperm.slane %v519_v57, %v1832_v36 }
 0x13c   : > { %v654_v8 = vrot.slane %v637_v63, 4  ;;  %v657_v9 = vsel %vm482_vm1, 0.0, %v656_v0  ;;  %v662_v11 = vsel %vm482_vm1, %v656_v0, %v637_v63  ;;  %v649_v12 = vperm.slane %v643_v4, %v1832_v36 }
 0x13d   : > { %v666_v13 = vperm.slane %v662_v11, %v1817_v22  ;;  %v667_v14 = vrot.slane %v657_v9, 4  ;;  %v660_v15 = vrot.slane %v653_v1, 4  ;;  %v509_v16 = vsel %vm482_vm1, %v501_v32, %v508_v2 }
 0x13e   : > { %v655_v17 = vsel %vm482_vm1, 0.0, %v654_v8  ;;  %v517_v18 = vperm.slane %v509_v16, %v1832_v36  ;;  %v529_v19 = vperm.slane %v521_v6, %v1832_v36  ;;  %v530_v23 = vrot.slane %v513_v5, 4 }
 0x13f   : > { %v661_v24 = vsel %vm482_vm1, 0.0, %v660_v15  ;;  %v534_v25 = vrot.slane %v525_v7, 4  ;;  %v658_v26 = vrot.slane %v649_v12, 4  ;;  %v668_v27 = vsel %vm482_vm1, %v667_v14, %v655_v17 }
 0x140   : > { %v678_v28 = vrot.slane %v661_v24, 4  ;;  %v531_v29 = vsel %vm482_vm1, 0.0, %v530_v23  ;;  %v532_v30 = vrot.slane %v517_v18, 4  ;;  %v536_v31 = vrot.slane %v529_v19, 4 }
 0x141   : > { %v535_v32 = vsel %vm482_vm1, 0.0, %v534_v25  ;;  %v659_v33 = vsel %vm482_vm1, 0.0, %v658_v26  ;;  %v672_v34 = vperm.slane %v668_v27, %v1817_v22  ;;  %v673_v35 = vsel %vm482_vm1, %v660_v15, %v649_v12 }
 0x142   : > { %v533_v38 = vsel %vm482_vm1, 0.0, %v532_v30  ;;  %v537_v39 = vsel %vm482_vm1, 0.0, %v536_v31  ;;  %v538_v40 = vsel %vm482_vm1, %v532_v30, %v513_v5  ;;  %v549_v41 = vsel %vm482_vm1, %v536_v31, %v525_v7 }
 0x143   : > { %v542_v42 = vperm.slane %v538_v40, %v1817_v22  ;;  %v543_v43 = vrot.slane %v533_v38, 4  ;;  %v553_v44 = vperm.slane %v549_v41, %v1817_v22  ;;  %v554_v45 = vrot.slane %v537_v39, 4 }
 0x144   : > { %v677_v46 = vperm.slane %v673_v35, %v1817_v22  ;;  %v679_v47 = vsel %vm482_vm1, %v678_v28, %v659_v33  ;;  %v686_v48 = vrot.slane %v666_v13, 4  ;;  %v684_v49 = vrot.slane %v672_v34, 4 }
 0x145   : > { %v544_v50 = vsel %vm482_vm1, %v543_v43, %v531_v29  ;;  %v555_v51 = vsel %vm482_vm1, %v554_v45, %v535_v32  ;;  %v574_v52 = vrot.slane %v553_v44, 4  ;;  %v683_v53 = vperm.slane %v679_v47, %v1817_v22 }
 0x146   : > { %v559_v54 = vperm.slane %v555_v51, %v1817_v22  ;;  %v687_v55 = vsel %vm482_vm1, %v672_v34, %v686_v48  ;;  %v698_v56 = vrot.slane %v677_v46, 4  ;;  %v685_v57 = vsel %vm482_vm1, %v684_v49, %v666_v13 }
 0x147   : > { %v695_v58 = vperm.slane %v687_v55, %v1832_v36  ;;  %v691_v59 = vperm.slane %v685_v57, %v1832_v36  ;;  %v696_v60 = vrot.slane %v683_v53, 4  ;;  %v548_v61 = vperm.slane %v544_v50, %v1817_v22 }
 0x148   : > { %v699_v62 = vsel %vm482_vm1, %v683_v53, %v698_v56  ;;  %v562_v63 = vrot.slane %v542_v42, 4  ;;  %v575_v0 = vsel %vm482_vm1, %v559_v54, %v574_v52  ;;  %v572_v1 = vrot.slane %v559_v54, 4 }
 0x149   : > { %v707_v2 = vperm.slane %v699_v62, %v1832_v36  ;;  %v714_v4 = vrot.slane %v695_v58, 4  ;;  %v697_v5 = vsel %vm482_vm1, %v696_v60, %v677_v46  ;;  %v710_v6 = vrot.slane %v691_v59, 4 }
 0x14a   : > { %v703_v7 = vperm.slane %v697_v5, %v1832_v36  ;;  %v563_v8 = vsel %vm482_vm1, %v548_v61, %v562_v63  ;;  %v583_v9 = vperm.slane %v575_v0, %v1832_v36  ;;  %v560_v11 = vrot.slane %v548_v61, 4 }
 0x14b   : > { %v715_v12 = vsel %vm482_vm1, %v707_v2, %v714_v4  ;;  %v712_v13 = vrot.slane %v707_v2, 4  ;;  %v571_v14 = vperm.slane %v563_v8, %v1832_v36  ;;  %v573_v15 = vsel %vm482_vm1, %v572_v1, %v553_v44 }
 0x14c   : > { %v719_v16 = vpack.c.bf16 %v715_v12, %v715_v12  ;;  %v711_v17 = vsel %vm482_vm1, %v703_v7, %v710_v6  ;;  %v708_v18 = vrot.slane %v703_v7, 4  ;;  %v561_v19 = vsel %vm482_vm1, %v560_v11, %v542_v42 }
 0x14d   : > { %v717_v23 = vpack.c.bf16 %v711_v17, %v711_v17  ;;  %v713_v24 = vsel %vm482_vm1, %v712_v13, %v695_v58  ;;  %v590_v25 = vrot.slane %v571_v14, 4  ;;  %v567_v26 = vperm.slane %v561_v19, %v1832_v36 }
 0x14e   : > { %v908_v27 = vsel %vm846_vm2, %v719_v16, 0  ;;  %v718_v28 = vpack.c.bf16 %v713_v24, %v713_v24  ;;  %v709_v29 = vsel %vm482_vm1, %v708_v18, %v691_v59  ;;  %v579_v30 = vperm.slane %v573_v15, %v1832_v36 }
 0x14f   : > { %917 = vmatpush.bf16.xpose.msrb.mxu1 %v908_v27  ;;  %v870_v31 = vsel %vm846_vm2, %v717_v23, 0  ;;  %v716_v32 = vpack.c.bf16 %v709_v29, %v709_v29  ;;  %v586_v33 = vrot.slane %v567_v26, 4  ;;  %v588_v35 = vrot.slane %v583_v9, 4 }
 0x150   : > { %879 = vmatpush.bf16.xpose.msra.mxu3 %v870_v31  ;;  %v889_v34 = vsel %vm846_vm2, %v718_v28, 0  ;;  %v584_v38 = vrot.slane %v579_v30, 4  ;;  %v591_v40 = vsel %vm482_vm1, %v583_v9, %v590_v25  ;;  %v923_v48 = vlaneseq }
 0x151   : > { %898 = vmatpush.bf16.xpose.msrb.mxu0 %v889_v34  ;;  %v851_v39 = vsel %vm846_vm2, %v716_v32, 0  ;;  %v587_v41 = vsel %vm482_vm1, %v579_v30, %v586_v33  ;;  %v589_v42 = vsel %vm482_vm1, %v588_v35, %v571_v14  ;;  %v595_v43 = vpack.c.bf16 %v591_v40, %v591_v40 }
 0x152   : > { %860 = vmatpush.bf16.xpose.msra.mxu2 %v851_v39  ;;  %v585_v44 = vsel %vm482_vm1, %v584_v38, %v567_v26  ;;  %v593_v45 = vpack.c.bf16 %v587_v41, %v587_v41  ;;  %v594_v46 = vpack.c.bf16 %v589_v42, %v589_v42  ;;  %v924_v49 = vshrl.u32 %v923_v48, 7 }
 0x153   : > { %v592_v47 = vpack.c.bf16 %v585_v44, %v585_v44  ;;  %v926_v50 = vand.u32 127, %v923_v48  ;;  %v1421_v4 = vpack.i.bf16 %v1815_v21, %v1808_v10  ;;  %v1426_v5 = vpack.i.bf16 %v1813_v20, %v1834_v37 }
 0x155   : > { %vm927_vm3 = vcmp.gt.s32.totalorder %v926_v50, %v924_v49 }
 0x156   : > { %1327 = vmatmul.msk.bf16.vlgmr.msrb.gmra.mxu1 %vm846_vm2, %v595_v43 }
 0x157   : > { %1325 = vmatmul.msk.bf16.vlgmr.msra.gmra.mxu3 %vm846_vm2, %v593_v45 }
 0x158   : > { %1326 = vmatmul.msk.bf16.vlgmr.msrb.gmra.mxu0 %vm846_vm2, %v594_v46 }
 0x159   : > { %1324 = vmatmul.msk.bf16.vlgmr.msra.gmra.mxu2 %vm846_vm2, %v592_v47 }
 0x1d3   : > { %v919_v51 = vpop.f32.mrf.mxu1 }
 0x1d4   : > { %v933_v58 = vsel %vm927_vm3, -1e+30, %v919_v51 }
 0x1d5   : > { %v900_v52 = vpop.f32.mrf.mxu0  ;;  %v943_v0 = vsel %vm846_vm2, %v933_v58, -inf }
 0x1d6   : > { %v932_v53 = vsel %vm927_vm3, -1e+30, %v900_v52 }
 0x1d7   : > { %v940_v54 = vsel %vm846_vm2, %v932_v53, -inf }
 0x1d8   : > { %941 = vmax.xlane.f32.xlu2 %v940_v54 }
 0x1da   : > { %v881_v55 = vpop.f32.mrf.mxu3 }
 0x1db   : > { %v931_v56 = vsel %vm927_vm3, -1e+30, %v881_v55  ;;  %v921_v57 = vpop.f32.mrf.mxu1 }
 0x1dc   : > { %v862_v59 = vpop.f32.mrf.mxu2  ;;  %v937_v60 = vsel %vm846_vm2, %v931_v56, -inf }
 0x1dd   : > { %v930_v61 = vsel %vm927_vm3, -1e+30, %v862_v59  ;;  %v902_v62 = vpop.f32.mrf.mxu0  ;;  %938 = vmax.xlane.f32.xlu1 %v937_v60 }
 0x1de   : > { %v934_v63 = vsel %vm846_vm2, %v930_v61, -inf }
 0x1df   : > { %935 = vmax.xlane.f32.xlu0 %v934_v63 }
 0x1e0   : > { %944 = vmax.xlane.f32.xlu2 %v943_v0 }
 0x1e2   : > { %v883_v1 = vpop.f32.mrf.mxu3 }
 0x1e4   : > { %v864_v2 = vpop.f32.mrf.mxu2 }
 0x1f3   : > { %1422 = vrot.lane.b32.xlu0 %v1421_v4, %s1630_s27 }
 0x1f6   : > { %1427 = vrot.lane.b32.xlu1 %v1426_v5, %s1630_s27 }
 0x24b   : > { %v942_v6 = vpop.xlane.xlu2 %941 }
 0x24c   : > { %v948_v7 = vsub.f32 %v932_v53, %v942_v6 }
 0x24e   : > { %v954_v8 = vmul.f32 1.442695, %v948_v7 }
 0x250   : > { %1436 = vpow2.f32 %v954_v8  ;;  %v939_v9 = vpop.xlane.xlu1 %938 }
 0x251   : > { %v947_v13 = vsub.f32 %v931_v56, %v939_v9 }
 0x252   : > { %v936_v11 = vpop.xlane.xlu0 %935 }
 0x253   : > { %v946_v12 = vsub.f32 %v930_v61, %v936_v11  ;;  %v952_v21 = vmul.f32 1.442695, %v947_v13  ;;  %v945_v16 = vpop.xlane.xlu2 %944 }
 0x254   : > { %v949_v37 = vsub.f32 %v933_v58, %v945_v16 }
 0x255   : > { %v950_v14 = vmul.f32 1.442695, %v946_v12 }
 0x256   : > { %v1927_v15 = vpop.eup %1436  ;;  %v956_v18 = vmul.f32 1.442695, %v949_v37 }
 0x257   : > { %1438 = vpow2.f32 %v950_v14  ;;  %v964_v10 = vsel %vm846_vm2, %v1927_v15, 0.0 }
 0x258   : > { %965 = vadd.xlane.f32.xlu0 %v964_v10  ;;  %1440 = vpow2.f32 %v952_v21 }
 0x259   : > { %1442 = vpow2.f32 %v956_v18 }
 0x25d   : > { %v1931_v20 = vpop.eup %1438 }
 0x25e   : > { %v958_v17 = vsel %vm846_vm2, %v1931_v20, 0.0  ;;  %v1935_v19 = vpop.eup %1440 }
 0x25f   : > { %959 = vadd.xlane.f32.xlu2 %v958_v17  ;;  %v961_v26 = vsel %vm846_vm2, %v1935_v19, 0.0  ;;  %v1941_v34 = vpop.eup %1442 }
 0x260   : > { %v967_v47 = vsel %vm846_vm2, %v1941_v34, 0.0 }
 0x265   : > { %v1423_v23 = vpop.permute.xlu0 %1422 }
 0x266   : > { %v1425_v24 = vunpack.i.h.bf16 %v1423_v23  ;;  %v1424_v25 = vunpack.i.l.bf16 %v1423_v23 }
 0x267   : > { %962 = vadd.xlane.f32.xlu2 %v961_v26 }
 0x268   : > { %v732_v27 = vrot.slane %v1425_v24, 4  ;;  %v734_v28 = vrot.slane %v1424_v25, 4  ;;  %v1428_v29 = vpop.permute.xlu1 %1427 }
 0x269   : > { %v1430_v30 = vunpack.i.h.bf16 %v1428_v29  ;;  %v1429_v31 = vunpack.i.l.bf16 %v1428_v29 }
 0x26a   : > { %v733_v32 = vsel %vm482_vm1, %v732_v27, %v1424_v25  ;;  %v735_v33 = vsel %vm482_vm1, %v1425_v24, %v734_v28 }
 0x26b   : > { %v739_v35 = vperm.slane %v733_v32, %v1817_v22  ;;  %v743_v38 = vperm.slane %v735_v33, %v1817_v22  ;;  %v744_v39 = vrot.slane %v1430_v30, 4  ;;  %v746_v40 = vrot.slane %v1429_v31, 4 }
 0x26d   : > { %v758_v41 = vrot.slane %v739_v35, 4  ;;  %v770_v42 = vrot.slane %v743_v38, 4  ;;  %v745_v43 = vsel %vm482_vm1, %v744_v39, %v1429_v31  ;;  %v747_v44 = vsel %vm482_vm1, %v1430_v30, %v746_v40 }
 0x26e   : > { %v751_v45 = vperm.slane %v745_v43, %v1817_v22  ;;  %v755_v46 = vperm.slane %v747_v44, %v1817_v22 }
 0x26f   : > { %968 = vadd.xlane.f32.xlu2 %v967_v47 }
 0x270   : > { %v756_v48 = vrot.slane %v751_v45, 4  ;;  %v759_v49 = vsel %vm482_vm1, %v751_v45, %v758_v41  ;;  %v768_v50 = vrot.slane %v755_v46, 4  ;;  %v771_v51 = vsel %vm482_vm1, %v755_v46, %v770_v42 }
 0x271   : > { %v767_v52 = vperm.slane %v759_v49, %v1832_v36  ;;  %v779_v53 = vperm.slane %v771_v51, %v1832_v36 }
 0x272   : > { %v757_v54 = vsel %vm482_vm1, %v756_v48, %v739_v35  ;;  %v769_v55 = vsel %vm482_vm1, %v768_v50, %v743_v38 }
 0x273   : > { %v763_v56 = vperm.slane %v757_v54, %v1832_v36  ;;  %v775_v57 = vperm.slane %v769_v55, %v1832_v36  ;;  %v782_v58 = vrot.slane %v767_v52, 4  ;;  %v786_v59 = vrot.slane %v779_v53, 4 }
 0x275   : > { %v780_v60 = vrot.slane %v763_v56, 4  ;;  %v783_v61 = vsel %vm482_vm1, 0.0, %v782_v58  ;;  %v784_v62 = vrot.slane %v775_v57, 4  ;;  %v787_v63 = vsel %vm482_vm1, 0.0, %v786_v59 }
 0x276   : > { %v788_v0 = vsel %vm482_vm1, %v782_v58, %v763_v56  ;;  %v793_v1 = vrot.slane %v783_v61, 4  ;;  %v799_v2 = vsel %vm482_vm1, %v786_v59, %v775_v57  ;;  %v804_v4 = vrot.slane %v787_v63, 4  ;;  %v1063_v61 = vld [vmem:[#allocation6] sm:$0xf] }
 0x277   : > { %v781_v5 = vsel %vm482_vm1, 0.0, %v780_v60  ;;  %v785_v6 = vsel %vm482_vm1, 0.0, %v784_v62  ;;  %v803_v7 = vperm.slane %v799_v2, %v1817_v22  ;;  %v792_v8 = vperm.slane %v788_v0, %v1817_v22  ;;  %v1064_v62 = vld [vmem:[#allocation6 + $0x4] sm:$0xf]  ;;  %v1066_v0 = vld [vmem:[#allocation6 + $0xc] sm:$0xf] }
 0x278   : > { %v794_v9 = vsel %vm482_vm1, %v793_v1, %v781_v5  ;;  %v805_v11 = vsel %vm482_vm1, %v804_v4, %v785_v6  ;;  %v1071_v63 = vsel %vm985_vm4, %v1063_v61, 0  ;;  %v1128_v1 = vsel %vm985_vm4, %v1066_v0, 0 }
 0x279   : > { %v798_v12 = vperm.slane %v794_v9, %v1817_v22  ;;  %v809_v13 = vperm.slane %v805_v11, %v1817_v22  ;;  %v812_v14 = vrot.slane %v792_v8, 4  ;;  %v824_v10 = vrot.slane %v803_v7, 4 }
 0x27b   : > { %v813_v21 = vsel %vm482_vm1, %v798_v12, %v812_v14  ;;  %v825_v16 = vsel %vm482_vm1, %v809_v13, %v824_v10  ;;  %v810_v37 = vrot.slane %v798_v12, 4  ;;  %v822_v17 = vrot.slane %v809_v13, 4 }
 0x27c   : > { %v821_v18 = vperm.slane %v813_v21, %v1832_v36  ;;  %v833_v23 = vperm.slane %v825_v16, %v1832_v36 }
 0x27d   : > { %v811_v24 = vsel %vm482_vm1, %v810_v37, %v792_v8  ;;  %v823_v25 = vsel %vm482_vm1, %v822_v17, %v803_v7 }
 0x27e   : > { %v838_v26 = vrot.slane %v833_v23, 4  ;;  %v840_v27 = vrot.slane %v821_v18, 4  ;;  %v817_v22 = vperm.slane %v811_v24, %v1832_v36  ;;  %v829_v28 = vperm.slane %v823_v25, %v1832_v36 }
 0x280   : > { %v839_v29 = vsel %vm482_vm1, %v838_v26, %v821_v18  ;;  %v841_v30 = vsel %vm482_vm1, %v833_v23, %v840_v27  ;;  %v834_v31 = vrot.slane %v829_v28, 4  ;;  %v836_v32 = vrot.slane %v817_v22, 4 }
 0x281   : > { %v844_v33 = vpack.c.bf16 %v839_v29, %v839_v29  ;;  %v845_v35 = vpack.c.bf16 %v841_v30, %v841_v30 }
 0x282   : > { %v835_v38 = vsel %vm482_vm1, %v834_v31, %v817_v22  ;;  %v837_v39 = vsel %vm482_vm1, %v829_v28, %v836_v32  ;;  %v1433_v28 = vld [vmem:[%s2040_s6] ss:$0 sm:$0xff] }
 0x283   : > { %v1025_v40 = vsel %vm985_vm4, %v844_v33, 0  ;;  %v1044_v41 = vsel %vm985_vm4, %v845_v35, 0  ;;  %v842_v42 = vpack.c.bf16 %v835_v38, %v835_v38  ;;  %v843_v43 = vpack.c.bf16 %v837_v39, %v837_v39 }
 0x284   : > { %1034 = vmatpush.bf16.msra.mxu0 %v1025_v40  ;;  %1053 = vmatpush.bf16.msra.mxu1 %v1044_v41  ;;  %v1631_v38 = vmov 32.0  }
 0x285   : > { %v987_v36 = vsel %vm985_vm4, %v842_v42, 0  ;;  %v1006_v44 = vsel %vm985_vm4, %v843_v43, 0 }
 0x286   : > { %996 = vmatpush.bf16.msrb.mxu2 %v987_v36  ;;  %1015 = vmatpush.bf16.msrb.mxu3 %v1006_v44 }
 0x288   : > { %1137 = vmatpush.bf16.msrb.mxu1 %v1128_v1 }
 0x28a   : > { %1080 = vmatpush.bf16.msra.mxu2 %v1071_v63 }
 0x2cb   : > { %v966_v45 = vpop.xlane.xlu0 %965 }
 0x2cc   : > { %1444 = vrcp.f32 %v966_v45 }
 0x2d2   : > { %v1445_v46 = vpop.eup %1444  ;;  %v960_v47 = vpop.xlane.xlu2 %959 }
 0x2d3   : > { %v976_v48 = vmul.f32 %v1445_v46, %v1927_v15  ;;  %1446 = vrcp.f32 %v960_v47 }
 0x2d5   : > { %v980_v49 = vpack.c.bf16 %v976_v48, %v976_v48 }
 0x2d7   : > { %1330 = vmatmul.msk.bf16.vlgmr.msra.gmra.mxu0 %vm846_vm2, %v980_v49 }
 0x2d9   : > { %v1447_v50 = vpop.eup %1446 }
 0x2da   : > { %v974_v51 = vmul.f32 %v1447_v50, %v1931_v20  ;;  %v963_v52 = vpop.xlane.xlu2 %962  ;;  %v1065_v20 = vld [vmem:[#allocation6 + $0x8] sm:$0xf] }
 0x2db   : > { %1448 = vrcp.f32 %v963_v52  ;;  %v1109_v60 = vsel %vm985_vm4, %v1065_v20, 0 }
 0x2dc   : > { %v978_v53 = vpack.c.bf16 %v974_v51, %v974_v51  ;;  %1118 = vmatpush.bf16.msrb.mxu0 %v1109_v60 }
 0x2de   : > { %1328 = vmatmul.msk.bf16.vlgmr.msrb.gmra.mxu2 %vm846_vm2, %v978_v53 }
 0x2e1   : > { %v1449_v54 = vpop.eup %1448 }
 0x2e2   : > { %v975_v55 = vmul.f32 %v1449_v54, %v1935_v19  ;;  %v969_v56 = vpop.xlane.xlu2 %968  ;;  %v1090_v19 = vsel %vm985_vm4, %v1064_v62, 0 }
 0x2e3   : > { %1450 = vrcp.f32 %v969_v56  ;;  %1099 = vmatpush.bf16.msra.mxu3 %v1090_v19 }
 0x2e4   : > { %v979_v57 = vpack.c.bf16 %v975_v55, %v975_v55  ;;  %1452 = vrcp.f32 %v1631_v38 }
 0x2e6   : > { %1329 = vmatmul.msk.bf16.vlgmr.msrb.gmra.mxu3 %vm846_vm2, %v979_v57  ;;  %v1434_v57 = vld [vmem:[%s2041_s7] ss:$0 sm:$0xff] }
 0x2e9   : > { %v1451_v15 = vpop.eup %1450 }
 0x2ea   : > { %v977_v58 = vmul.f32 %v1451_v15, %v1941_v34  ;;  %v1453_v39 = vpop.eup %1452 }
 0x2eb   : > { %v1162_v40 = vmul.f32 32.0, %v1453_v39  ;;  %vm1166_vm5 = vweird.f32 %v1453_v39 }
 0x2ec   : > { %v981_v59 = vpack.c.bf16 %v977_v58, %v977_v58  ;;  %v1435_v58 = vld [vmem:[#allocation7] ss:$0 sm:$0xff] }
 0x2ed   : > { %v1163_v41 = vsub.f32 1.0, %v1162_v40 }
 0x2ee   : > { %1331 = vmatmul.msk.bf16.vlgmr.msra.gmra.mxu1 %vm846_vm2, %v981_v59 }
 0x2ef   : > { %v1164_v42 = vmul.f32 %v1453_v39, %v1163_v41 }
 0x2f1   : > { %v1165_v43 = vadd.f32 %v1453_v39, %v1164_v42 }
 0x2f3   : > { %v1167_v36 = vsel %vm1166_vm5, %v1453_v39, %v1165_v43 }
 0x354   : > { %v1036_v34 = vpop.f32.mrf.mxu0 }
 0x355   : > { %v1061_v2 = vpack.c.bf16 %v1036_v34, %v1036_v34 }
 0x357   : > { %1334 = vmatmul.msk.bf16.vlgmr.msrb.gmra.mxu0 %vm846_vm2, %v1061_v2 }
 0x35c   : > { %v1038_v4 = vpop.f32.mrf.mxu0 }
 0x361   : > { %v998_v5 = vpop.f32.mrf.mxu2 }
 0x362   : > { %v1059_v6 = vpack.c.bf16 %v998_v5, %v998_v5 }
 0x364   : > { %1332 = vmatmul.msk.bf16.vlgmr.msra.gmra.mxu2 %vm846_vm2, %v1059_v6 }
 0x369   : > { %v1000_v7 = vpop.f32.mrf.mxu2  ;;  %v1017_v8 = vpop.f32.mrf.mxu3 }
 0x36a   : > { %v1060_v9 = vpack.c.bf16 %v1017_v8, %v1017_v8 }
 0x36b   : > { %v1055_v11 = vpop.f32.mrf.mxu1 }
 0x36c   : > { %v1062_v12 = vpack.c.bf16 %v1055_v11, %v1055_v11  ;;  %1333 = vmatmul.msk.bf16.vlgmr.msra.gmra.mxu3 %vm846_vm2, %v1060_v9 }
 0x36e   : > { %1335 = vmatmul.msk.bf16.vlgmr.msrb.gmra.mxu1 %vm846_vm2, %v1062_v12 }
 0x371   : > { %v1019_v13 = vpop.f32.mrf.mxu3 }
 0x373   : > { %v1057_v14 = vpop.f32.mrf.mxu1 }
 0x3d4   : > { %v1120_v10 = vpop.f32.mrf.mxu0 }
 0x3d5   : > { %v1146_v26 = vsel %vm421_vm0, %v1120_v10, 0.0 }
 0x3dc   : > { %v1122_v21 = vpop.f32.mrf.mxu0 }
 0x3e7   : > { %v1082_v16 = vpop.f32.mrf.mxu2 }
 0x3e8   : > { %v1143_v23 = vsel %vm421_vm0, %v1082_v16, 0.0 }
 0x3eb   : > { %v1139_v37 = vpop.f32.mrf.mxu1 }
 0x3ec   : > { %v1148_v29 = vsel %vm421_vm0, %v1139_v37, 0.0 }
 0x3ef   : > { %v1084_v17 = vpop.f32.mrf.mxu2  ;;  %v1101_v18 = vpop.f32.mrf.mxu3 }
 0x3f0   : > { %v1144_v24 = vsel %vm421_vm0, %v1101_v18, 0.0 }
 0x3f1   : > { %v1145_v25 = vadd.f32 %v1144_v24, %v1143_v23 }
 0x3f3   : > { %v1147_v27 = vadd.f32 %v1146_v26, %v1145_v25  ;;  %v1141_v22 = vpop.f32.mrf.mxu1 }
 0x3f5   : > { %v1149_v30 = vadd.f32 %v1148_v29, %v1147_v27 }
 0x3f7   : > { %v1103_v31 = vpop.f32.mrf.mxu3  ;;  %v1154_v32 = vadd.f32 %v1433_v28, %v1149_v30 }
 0x3f9   : > { %v1155_v33 = vadd.f32 %v1154_v32, %v1793_v3 }
 0x3fb   : > { %v1158_v35 = vsel %vm421_vm0, %v1155_v33, 0.0 }
 0x3fc   : > { %1159 = vadd.xlane.f32.xlu1 %v1158_v35 }
 0x46f   : > { %v1160_v44 = vpop.xlane.xlu1 %1159 }
 0x470   : > { %v1168_v45 = vmul.f32 %v1167_v36, %v1160_v44 }
 0x472   : > { %v1169_v46 = vsub.f32 %v1155_v33, %v1168_v45 }
 0x474   : > { %v1170_v47 = vmul.f32 %v1169_v46, %v1169_v46 }
 0x476   : > { %v1171_v3 = vsel %vm421_vm0, %v1170_v47, 0.0 }
 0x477   : > { %1172 = vadd.xlane.f32.xlu2 %v1171_v3 }
 0x4ea   : > { %v1173_v48 = vpop.xlane.xlu2 %1172 }
 0x4eb   : > { %v1174_v49 = vmul.f32 %v1173_v48, %v1167_v36 }
 0x4ed   : > { %v1175_v50 = vadd.f32 1e-05, %v1174_v49 }
 0x4ef   : > { %1454 = vrsqrt.f32 %v1175_v50  ;;  %vm1182_vm7 = vweird.f32 %v1175_v50 }
 0x4f5   : > { %v1455_v51 = vpop.eup %1454 }
 0x4f6   : > { %v1177_v52 = vmul.f32 %v1455_v51, %v1175_v50  ;;  %vm1183_vm6 = vweird.f32 %v1455_v51 }
 0x4f7   : > { %vm1184_vm8 = vmor %vm1182_vm7, %vm1183_vm6 }
 0x4f8   : > { %v1178_v53 = vmul.f32 %v1455_v51, %v1177_v52 }
 0x4fa   : > { %v1179_v54 = vmul.f32 0.5, %v1178_v53 }
 0x4fc   : > { %v1180_v55 = vsub.f32 1.5, %v1179_v54 }
 0x4fe   : > { %v1181_v56 = vmul.f32 %v1455_v51, %v1180_v55 }
 0x500   : > { %v1185_v15 = vsel %vm1184_vm8, %v1455_v51, %v1181_v56 }
 0x501   : > { %v1186_v59 = vmul.f32 %v1185_v15, %v1169_v46 }
 0x503   : > { %v1190_v20 = vmul.f32 %v1434_v57, %v1186_v59 }
 0x505   : > { %v1194_v60 = vadd.f32 %v1435_v58, %v1190_v20 }
 0x507   : > { %v1195_v61 = vpack.c.bf16 %v1194_v60, %v1194_v60 }
 0x509   : > { %1197 = vst.msk [vmem:[%s397_s14] sm:$0xf] %vm1196_vm9, %v1195_v61 }
 0x50a PF: > { %p21_p3 = scmp.ge.s32.totalorder %s1736_s20, 4   ;;  %s2048_s30 = smov %s1610_s10 }
 0x50b   : > { %s2049_s10 = smov %s1614_s11  ;;  %s2050_s11 = smov %s1747_s15 }
 0x50c   : > { %s2051_s12 = smov %s1736_s20  ;;  %23 = sbr.rel (!%p21_p3) target bundleno = 5 (0x5), region = 108 }
 0x511   :  { %1217 = vsyncpa [#allocation3], 1 }
 0x512   :  { %1219 = vsyncpa [#allocation3 + $0x1], 1 }
 0x513   :  { %1220 = vsyncpa [#allocation5], 1 }
 0x514   :  { %1221 = vsyncpa [#allocation8], 1 }

</bundles_post_ra>
